<compile_context>
chip_gen: v7x
topology: tpu7x:2x2x1
jax: 0.10.0
libtpu: 0.0.40
codegen_flags: <defaults>
</compile_context>

<pallas_src>
import functools

import jax
import jax.numpy as jnp
from jax.experimental import pallas as pl
from jax.experimental.pallas import tpu as pltpu

_SUBLANE_BF16 = 16                      # bf16 packs 2 rows/sublane -> 16-row alignment
_MAX_TILE_M_DEFAULT = 512
_RESIDENT_WEIGHT_VMEM_BUDGET = 48 << 20  # conservative for v7x (64 MiB physical VMEM)


def _round_up(x: int, m: int) -> int:
    return ((x + m - 1) // m) * m


def _num_tensorcores_per_chip() -> int:
    """v7x has 2 TensorCores per chip; v5e/v6e have 1 (grid is a serial loop there)."""
    try:
        kind = jax.devices()[0].device_kind.lower()
    except Exception:  # pragma: no cover - defensive
        return 1
    return 2 if ("v7" in kind or "7x" in kind) else 1


def _choose_tile_m(M: int, n_cores: int, max_tile_m: int) -> int:
    """Row tile: one block per TensorCore for small M (no pointless serial grid
    steps on single-TC v5e/v6e), capped at max_tile_m for large M."""
    rows = _round_up(max(M, 1), _SUBLANE_BF16)
    per_core = _round_up(pl.cdiv(rows, max(n_cores, 1)), _SUBLANE_BF16)
    return int(min(max(per_core, _SUBLANE_BF16), max_tile_m))


def _fused_mlp_kernel(*refs, relu_flags, matmul_dtype):
    """One [tile_m, in] row tile through the whole MLP; all weights VMEM-resident.

    refs = (x_ref, w1_ref, b1_ref, ..., wn_ref, bn_ref, o_ref).
    Matmuls run on the MXU in `matmul_dtype` (bf16 by default) with f32
    accumulation; bias-add and ReLU stay in f32.
    """
    x_ref = refs[0]
    o_ref = refs[-1]
    wb_refs = refs[1:-1]

    h = x_ref[...]
    for i, apply_relu in enumerate(relu_flags):
        w = wb_refs[2 * i][...]           # (K_i, N_i), full weight in VMEM
        b = wb_refs[2 * i + 1][...]       # (1, N_i) f32, broadcasts over rows
        h = jnp.dot(h.astype(matmul_dtype), w.astype(matmul_dtype),
                    preferred_element_type=jnp.float32) + b.astype(jnp.float32)
        if apply_relu:
            h = jnp.maximum(h, 0.0)
    o_ref[...] = h.astype(o_ref.dtype)
    # TODO(synk): for very large row tiles, sub-tile rows with
    # lax.fori_loop(..., unroll=True) so the chained activations stay register
    # resident while the outer DMA tile remains large.


def mlp_forward_pallas(x, params, *, has_final_linear: bool,
                       matmul_dtype=jnp.bfloat16,
                       max_tile_m: int = _MAX_TILE_M_DEFAULT):
    """x: [M, in] f32; params: list of (W [in, out], b [out]) (pre-transposed)."""
    M, K = x.shape
    n_layers = len(params)
    relu_flags = tuple(
        not (has_final_linear and i == n_layers - 1) for i in range(n_layers)
    )
    dims = [K] + [w.shape[1] for (w, _) in params]
    n_out = dims[-1]

    # Row tiling only; feature dims stay unpadded (block last dim == full dim).
    n_cores = _num_tensorcores_per_chip()
    tile_m = _choose_tile_m(M, n_cores, max_tile_m)
    m_pad = _round_up(M, tile_m)
    x_p = x if m_pad == M else jnp.pad(x, ((0, m_pad - M), (0, 0)))

    # Weights in matmul_dtype (bf16: halves DMA bytes + VMEM, MXU native),
    # biases kept f32 (VALU add / ReLU in f32, exact for the padded rows too).
    flat_params = []
    for (w, b) in params:
        flat_params.append(w.astype(matmul_dtype))
        flat_params.append(b.reshape(1, -1).astype(jnp.float32))

    # VMEM budget: all weights resident (x2 covers the double-buffered fallback
    # path) + double-buffered x/out row tiles + activation slack.
    weight_bytes = sum(int(p.size) * p.dtype.itemsize for p in flat_params)
    io_bytes = 2 * tile_m * (dims[0] + n_out) * x.dtype.itemsize
    act_bytes = 4 * tile_m * max(dims) * 4
    est_vmem = 2 * weight_bytes + io_bytes + act_bytes
    if est_vmem > _RESIDENT_WEIGHT_VMEM_BUDGET:
        # TODO(synk): K/N-tiled streaming-weight fallback for large hidden dims.
        raise NotImplementedError(
            f"resident-weight fused MLP needs ~{est_vmem >> 20} MiB VMEM; the "
            "K/N-tiled streaming fallback is not implemented for this config")
    vmem_limit = int(min(max(est_vmem + (8 << 20), 32 << 20), 64 << 20))

    # Advisory cost estimate (helps XLA schedule surrounding ops).
    flops = int(sum(2 * m_pad * dims[i] * dims[i + 1] for i in range(n_layers)))
    bytes_accessed = int(x_p.size * x_p.dtype.itemsize + weight_bytes
                         + m_pad * n_out * x.dtype.itemsize)
    cost = pl.CostEstimate(flops=flops, transcendentals=0,
                           bytes_accessed=bytes_accessed)

    kernel = functools.partial(_fused_mlp_kernel, relu_flags=relu_flags,
                               matmul_dtype=matmul_dtype)
    x_spec = pl.BlockSpec((tile_m, dims[0]), lambda i: (i, 0))
    out_spec = pl.BlockSpec((tile_m, n_out), lambda i: (i, 0))

    def build(param_spec_fn):
        in_specs = [x_spec] + [param_spec_fn(p) for p in flat_params]
        return pl.pallas_call(
            kernel,
            out_shape=jax.ShapeDtypeStruct((m_pad, n_out), x.dtype),
            grid_spec=pltpu.PrefetchScalarGridSpec(
                num_scalar_prefetch=0,
                grid=(m_pad // tile_m,),
                in_specs=in_specs,
                out_specs=out_spec,
            ),
            compiler_params=pltpu.CompilerParams(
                dimension_semantics=("parallel",),
                vmem_limit_bytes=vmem_limit,
            ),
            cost_estimate=cost,
        )

    try:
        # Preferred: whole weight/bias arrays as a SINGLE resident VMEM copy
        # (no per-input double buffering -> half the resident-weight VMEM).
        out_padded = build(
            lambda p: pl.BlockSpec(memory_space=pltpu.MemorySpace.VMEM)
        )(x_p, *flat_params)
    except Exception:
        # Fallback: whole-array blocks with a constant index map (DMA'd once,
        # but pipelined with the default 2 buffers).  Guaranteed-supported path.
        out_padded = build(
            lambda p: pl.BlockSpec(p.shape, lambda i: (0, 0))
        )(x_p, *flat_params)

    return out_padded if m_pad == M else out_padded[:M]


def init_mlp_params(key, in_channels, hidden_channels, num_layers, out_channels):
    """PyTorch-Linear-style init; weights pre-transposed to [in, out]."""
    dims = [in_channels] + [hidden_channels] * num_layers
    if out_channels is not None:
        dims.append(out_channels)

    params = []
    for i in range(len(dims) - 1):
        fan_in, fan_out = dims[i], dims[i + 1]
        key, kw, kb = jax.random.split(key, 3)
        bound = 1.0 / jnp.sqrt(fan_in)
        w = jax.random.uniform(kw, (fan_in, fan_out), jnp.float32, -bound, bound)
        b = jax.random.uniform(kb, (fan_out,), jnp.float32, -bound, bound)
        params.append((w, b))
    return params


def mlp_reference(x, params, *, has_final_linear: bool):
    n = len(params)
    for idx, (w, b) in enumerate(params):
        x = x @ w + b
        if not (has_final_linear and idx == n - 1):
            x = jnp.maximum(x, 0.0)
    return x


if __name__ == "__main__":
    # Module config (small, consistent with MLP.__init__):
    in_channels = 16
    hidden_channels = 32
    num_layers = 2
    out_channels = 8          # final projection present
    num_nodes = 200           # not a multiple of the row tile -> exercises row padding

    key = jax.random.PRNGKey(0)
    key, kx = jax.random.split(key)
    x = jax.random.normal(kx, (num_nodes, in_channels), jnp.float32)

    params = init_mlp_params(key, in_channels, hidden_channels, num_layers,
                             out_channels)

    out = mlp_forward_pallas(x, params, has_final_linear=out_channels is not None)
    out = jax.block_until_ready(out)

    ref = mlp_reference(x, params, has_final_linear=out_channels is not None)
    assert out.shape == (num_nodes, out_channels), out.shape
    # bf16 matmul operands (f32 accumulation) -> slightly loosened tolerance.
    assert jnp.allclose(out, ref, atol=3e-2, rtol=3e-2), "mismatch vs reference"

    print("KERNEL_OK")
</pallas_src>

<mosaic_0001>
module attributes {stable_mosaic.version = 11 : i64} {
  func.func @_fused_mlp_kernel(%arg0: i32, %arg1: memref<208x16xf32, #tpu.memory_space<vmem>>, %arg2: memref<16x32xbf16, #tpu.memory_space<vmem>>, %arg3: memref<1x32xf32, #tpu.memory_space<vmem>>, %arg4: memref<32x32xbf16, #tpu.memory_space<vmem>>, %arg5: memref<1x32xf32, #tpu.memory_space<vmem>>, %arg6: memref<32x8xbf16, #tpu.memory_space<vmem>>, %arg7: memref<1x8xf32, #tpu.memory_space<vmem>>, %arg8: memref<208x8xf32, #tpu.memory_space<vmem>>) attributes {dimension_semantics = [#tpu.dimension_semantics<parallel>], iteration_bounds = array<i64: 1>, scalar_prefetch = 0 : i64, scratch_operands = 0 : i64, tpu.core_type = #tpu.core_type<tc>, window_params = [{transform_indices = @transform_0, window_bounds = array<i64: 208, 16>}, {pipeline_mode = #tpu.pipeline_mode<synchronous>, transform_indices = @transform_1, window_bounds = array<i64: 16, 32>}, {pipeline_mode = #tpu.pipeline_mode<synchronous>, transform_indices = @transform_2, window_bounds = array<i64: 1, 32>}, {pipeline_mode = #tpu.pipeline_mode<synchronous>, transform_indices = @transform_3, window_bounds = array<i64: 32, 32>}, {pipeline_mode = #tpu.pipeline_mode<synchronous>, transform_indices = @transform_4, window_bounds = array<i64: 1, 32>}, {pipeline_mode = #tpu.pipeline_mode<synchronous>, transform_indices = @transform_5, window_bounds = array<i64: 32, 8>}, {pipeline_mode = #tpu.pipeline_mode<synchronous>, transform_indices = @transform_6, window_bounds = array<i64: 1, 8>}, {transform_indices = @transform_7, window_bounds = array<i64: 208, 8>}]} {
    %c0 = arith.constant 0 : index
    %c0_0 = arith.constant 0 : index
    %0 = vector.load %arg1[%c0, %c0_0] : memref<208x16xf32, #tpu.memory_space<vmem>>, vector<208x16xf32>
    %c0_1 = arith.constant 0 : index
    %c0_2 = arith.constant 0 : index
    %1 = vector.load %arg2[%c0_1, %c0_2] : memref<16x32xbf16, #tpu.memory_space<vmem>>, vector<16x32xbf16>
    %c0_3 = arith.constant 0 : index
    %c0_4 = arith.constant 0 : index
    %2 = vector.load %arg3[%c0_3, %c0_4] : memref<1x32xf32, #tpu.memory_space<vmem>>, vector<1x32xf32>
    %3 = arith.truncf %0 : vector<208x16xf32> to vector<208x16xbf16>
    %cst = arith.constant dense<0.000000e+00> : vector<208x32xf32>
    %4 = tpu.matmul %3, %1, %cst {dimension_numbers = #tpu.dot_dimension_numbers<[1], [0], [0], [1], [0, 0, 1, 1], [], []>} : vector<208x16xbf16>, vector<16x32xbf16>, vector<208x32xf32> -> vector<208x32xf32>
    %5 = vector.broadcast %2 : vector<1x32xf32> to vector<208x32xf32>
    %6 = arith.addf %4, %5 : vector<208x32xf32>
    %cst_5 = arith.constant 0.000000e+00 : f32
    %7 = vector.broadcast %cst_5 : f32 to vector<208x32xf32>
    %8 = arith.maximumf %6, %7 : vector<208x32xf32>
    %c0_6 = arith.constant 0 : index
    %c0_7 = arith.constant 0 : index
    %9 = vector.load %arg4[%c0_6, %c0_7] : memref<32x32xbf16, #tpu.memory_space<vmem>>, vector<32x32xbf16>
    %c0_8 = arith.constant 0 : index
    %c0_9 = arith.constant 0 : index
    %10 = vector.load %arg5[%c0_8, %c0_9] : memref<1x32xf32, #tpu.memory_space<vmem>>, vector<1x32xf32>
    %11 = arith.truncf %8 : vector<208x32xf32> to vector<208x32xbf16>
    %cst_10 = arith.constant dense<0.000000e+00> : vector<208x32xf32>
    %12 = tpu.matmul %11, %9, %cst_10 {dimension_numbers = #tpu.dot_dimension_numbers<[1], [0], [0], [1], [0, 0, 1, 1], [], []>} : vector<208x32xbf16>, vector<32x32xbf16>, vector<208x32xf32> -> vector<208x32xf32>
    %13 = vector.broadcast %10 : vector<1x32xf32> to vector<208x32xf32>
    %14 = arith.addf %12, %13 : vector<208x32xf32>
    %cst_11 = arith.constant 0.000000e+00 : f32
    %15 = vector.broadcast %cst_11 : f32 to vector<208x32xf32>
    %16 = arith.maximumf %14, %15 : vector<208x32xf32>
    %c0_12 = arith.constant 0 : index
    %c0_13 = arith.constant 0 : index
    %17 = vector.load %arg6[%c0_12, %c0_13] : memref<32x8xbf16, #tpu.memory_space<vmem>>, vector<32x8xbf16>
    %c0_14 = arith.constant 0 : index
    %c0_15 = arith.constant 0 : index
    %18 = vector.load %arg7[%c0_14, %c0_15] : memref<1x8xf32, #tpu.memory_space<vmem>>, vector<1x8xf32>
    %19 = arith.truncf %16 : vector<208x32xf32> to vector<208x32xbf16>
    %cst_16 = arith.constant dense<0.000000e+00> : vector<208x8xf32>
    %20 = tpu.matmul %19, %17, %cst_16 {dimension_numbers = #tpu.dot_dimension_numbers<[1], [0], [0], [1], [0, 0, 1, 1], [], []>} : vector<208x32xbf16>, vector<32x8xbf16>, vector<208x8xf32> -> vector<208x8xf32>
    %21 = vector.broadcast %18 : vector<1x8xf32> to vector<208x8xf32>
    %22 = arith.addf %20, %21 : vector<208x8xf32>
    %c0_17 = arith.constant 0 : index
    %c0_18 = arith.constant 0 : index
    %23 = vector.load %arg8[%c0_17, %c0_18] : memref<208x8xf32, #tpu.memory_space<vmem>>, vector<208x8xf32>
    tpu.vector_store %arg8[%c0_17, %c0_18], %22 {strides = array<i32>} : memref<208x8xf32, #tpu.memory_space<vmem>>, vector<208x8xf32>,
    return
  }
  func.func @transform_0(%arg0: i32) -> (i32, i32) {
    %c0_i32 = arith.constant 0 : i32
    %c0_i32_0 = arith.constant 0 : i32
    return %arg0, %c0_i32 : i32, i32
  }
  func.func @transform_1(%arg0: i32) -> (i32, i32) {
    %c0_i32 = arith.constant 0 : i32
    %c0_i32_0 = arith.constant 0 : i32
    %c0_i32_1 = arith.constant 0 : i32
    return %c0_i32, %c0_i32_0 : i32, i32
  }
  func.func @transform_2(%arg0: i32) -> (i32, i32) {
    %c0_i32 = arith.constant 0 : i32
    %c0_i32_0 = arith.constant 0 : i32
    %c0_i32_1 = arith.constant 0 : i32
    return %c0_i32, %c0_i32_0 : i32, i32
  }
  func.func @transform_3(%arg0: i32) -> (i32, i32) {
    %c0_i32 = arith.constant 0 : i32
    %c0_i32_0 = arith.constant 0 : i32
    %c0_i32_1 = arith.constant 0 : i32
    return %c0_i32, %c0_i32_0 : i32, i32
  }
  func.func @transform_4(%arg0: i32) -> (i32, i32) {
    %c0_i32 = arith.constant 0 : i32
    %c0_i32_0 = arith.constant 0 : i32
    %c0_i32_1 = arith.constant 0 : i32
    return %c0_i32, %c0_i32_0 : i32, i32
  }
  func.func @transform_5(%arg0: i32) -> (i32, i32) {
    %c0_i32 = arith.constant 0 : i32
    %c0_i32_0 = arith.constant 0 : i32
    %c0_i32_1 = arith.constant 0 : i32
    return %c0_i32, %c0_i32_0 : i32, i32
  }
  func.func @transform_6(%arg0: i32) -> (i32, i32) {
    %c0_i32 = arith.constant 0 : i32
    %c0_i32_0 = arith.constant 0 : i32
    %c0_i32_1 = arith.constant 0 : i32
    return %c0_i32, %c0_i32_0 : i32, i32
  }
  func.func @transform_7(%arg0: i32) -> (i32, i32) {
    %c0_i32 = arith.constant 0 : i32
    %c0_i32_0 = arith.constant 0 : i32
    return %arg0, %c0_i32 : i32, i32
  }
}

module attributes {stable_mosaic.version = 11 : i64} {
  func.func @_fused_mlp_kernel(%arg0: i32, %arg1: memref<208x16xf32, #tpu.memory_space<vmem>>, %arg2: memref<16x32xbf16, #tpu.memory_space<vmem>>, %arg3: memref<1x32xf32, #tpu.memory_space<vmem>>, %arg4: memref<32x32xbf16, #tpu.memory_space<vmem>>, %arg5: memref<1x32xf32, #tpu.memory_space<vmem>>, %arg6: memref<32x8xbf16, #tpu.memory_space<vmem>>, %arg7: memref<1x8xf32, #tpu.memory_space<vmem>>, %arg8: memref<208x8xf32, #tpu.memory_space<vmem>>) attributes {dimension_semantics = [#tpu.dimension_semantics<parallel>], iteration_bounds = array<i64: 1>, scalar_prefetch = 0 : i64, scratch_operands = 0 : i64, tpu.core_type = #tpu.core_type<tc>, window_params = [{transform_indices = @transform_0, window_bounds = array<i64: 208, 16>}, {pipeline_mode = #tpu.pipeline_mode<synchronous>, transform_indices = @transform_1, window_bounds = array<i64: 16, 32>}, {pipeline_mode = #tpu.pipeline_mode<synchronous>, transform_indices = @transform_2, window_bounds = array<i64: 1, 32>}, {pipeline_mode = #tpu.pipeline_mode<synchronous>, transform_indices = @transform_3, window_bounds = array<i64: 32, 32>}, {pipeline_mode = #tpu.pipeline_mode<synchronous>, transform_indices = @transform_4, window_bounds = array<i64: 1, 32>}, {pipeline_mode = #tpu.pipeline_mode<synchronous>, transform_indices = @transform_5, window_bounds = array<i64: 32, 8>}, {pipeline_mode = #tpu.pipeline_mode<synchronous>, transform_indices = @transform_6, window_bounds = array<i64: 1, 8>}, {transform_indices = @transform_7, window_bounds = array<i64: 208, 8>}]} {
    %c0 = arith.constant 0 : index
    %c0_0 = arith.constant 0 : index
    %0 = vector.load %arg1[%c0, %c0_0] : memref<208x16xf32, #tpu.memory_space<vmem>>, vector<208x16xf32>
    %c0_1 = arith.constant 0 : index
    %c0_2 = arith.constant 0 : index
    %1 = vector.load %arg2[%c0_1, %c0_2] : memref<16x32xbf16, #tpu.memory_space<vmem>>, vector<16x32xbf16>
    %c0_3 = arith.constant 0 : index
    %c0_4 = arith.constant 0 : index
    %2 = vector.load %arg3[%c0_3, %c0_4] : memref<1x32xf32, #tpu.memory_space<vmem>>, vector<1x32xf32>
    %3 = arith.truncf %0 : vector<208x16xf32> to vector<208x16xbf16>
    %cst = arith.constant dense<0.000000e+00> : vector<208x32xf32>
    %4 = tpu.matmul %3, %1, %cst {dimension_numbers = #tpu.dot_dimension_numbers<[1], [0], [0], [1], [0, 0, 1, 1], [], []>} : vector<208x16xbf16>, vector<16x32xbf16>, vector<208x32xf32> -> vector<208x32xf32>
    %5 = vector.broadcast %2 : vector<1x32xf32> to vector<208x32xf32>
    %6 = arith.addf %4, %5 : vector<208x32xf32>
    %cst_5 = arith.constant 0.000000e+00 : f32
    %7 = vector.broadcast %cst_5 : f32 to vector<208x32xf32>
    %8 = arith.maximumf %6, %7 : vector<208x32xf32>
    %c0_6 = arith.constant 0 : index
    %c0_7 = arith.constant 0 : index
    %9 = vector.load %arg4[%c0_6, %c0_7] : memref<32x32xbf16, #tpu.memory_space<vmem>>, vector<32x32xbf16>
    %c0_8 = arith.constant 0 : index
    %c0_9 = arith.constant 0 : index
    %10 = vector.load %arg5[%c0_8, %c0_9] : memref<1x32xf32, #tpu.memory_space<vmem>>, vector<1x32xf32>
    %11 = arith.truncf %8 : vector<208x32xf32> to vector<208x32xbf16>
    %cst_10 = arith.constant dense<0.000000e+00> : vector<208x32xf32>
    %12 = tpu.matmul %11, %9, %cst_10 {dimension_numbers = #tpu.dot_dimension_numbers<[1], [0], [0], [1], [0, 0, 1, 1], [], []>} : vector<208x32xbf16>, vector<32x32xbf16>, vector<208x32xf32> -> vector<208x32xf32>
    %13 = vector.broadcast %10 : vector<1x32xf32> to vector<208x32xf32>
    %14 = arith.addf %12, %13 : vector<208x32xf32>
    %cst_11 = arith.constant 0.000000e+00 : f32
    %15 = vector.broadcast %cst_11 : f32 to vector<208x32xf32>
    %16 = arith.maximumf %14, %15 : vector<208x32xf32>
    %c0_12 = arith.constant 0 : index
    %c0_13 = arith.constant 0 : index
    %17 = vector.load %arg6[%c0_12, %c0_13] : memref<32x8xbf16, #tpu.memory_space<vmem>>, vector<32x8xbf16>
    %c0_14 = arith.constant 0 : index
    %c0_15 = arith.constant 0 : index
    %18 = vector.load %arg7[%c0_14, %c0_15] : memref<1x8xf32, #tpu.memory_space<vmem>>, vector<1x8xf32>
    %19 = arith.truncf %16 : vector<208x32xf32> to vector<208x32xbf16>
    %cst_16 = arith.constant dense<0.000000e+00> : vector<208x8xf32>
    %20 = tpu.matmul %19, %17, %cst_16 {dimension_numbers = #tpu.dot_dimension_numbers<[1], [0], [0], [1], [0, 0, 1, 1], [], []>} : vector<208x32xbf16>, vector<32x8xbf16>, vector<208x8xf32> -> vector<208x8xf32>
    %21 = vector.broadcast %18 : vector<1x8xf32> to vector<208x8xf32>
    %22 = arith.addf %20, %21 : vector<208x8xf32>
    %c0_17 = arith.constant 0 : index
    %c0_18 = arith.constant 0 : index
    %23 = vector.load %arg8[%c0_17, %c0_18] : memref<208x8xf32, #tpu.memory_space<vmem>>, vector<208x8xf32>
    tpu.vector_store %arg8[%c0_17, %c0_18], %22 {strides = array<i32>} : memref<208x8xf32, #tpu.memory_space<vmem>>, vector<208x8xf32>,
    return
  }
  func.func @transform_0(%arg0: i32) -> (i32, i32) {
    %c0_i32 = arith.constant 0 : i32
    %c0_i32_0 = arith.constant 0 : i32
    return %arg0, %c0_i32 : i32, i32
  }
  func.func @transform_1(%arg0: i32) -> (i32, i32) {
    %c0_i32 = arith.constant 0 : i32
    %c0_i32_0 = arith.constant 0 : i32
    %c0_i32_1 = arith.constant 0 : i32
    return %c0_i32, %c0_i32_0 : i32, i32
  }
  func.func @transform_2(%arg0: i32) -> (i32, i32) {
    %c0_i32 = arith.constant 0 : i32
    %c0_i32_0 = arith.constant 0 : i32
    %c0_i32_1 = arith.constant 0 : i32
    return %c0_i32, %c0_i32_0 : i32, i32
  }
  func.func @transform_3(%arg0: i32) -> (i32, i32) {
    %c0_i32 = arith.constant 0 : i32
    %c0_i32_0 = arith.constant 0 : i32
    %c0_i32_1 = arith.constant 0 : i32
    return %c0_i32, %c0_i32_0 : i32, i32
  }
  func.func @transform_4(%arg0: i32) -> (i32, i32) {
    %c0_i32 = arith.constant 0 : i32
    %c0_i32_0 = arith.constant 0 : i32
    %c0_i32_1 = arith.constant 0 : i32
    return %c0_i32, %c0_i32_0 : i32, i32
  }
  func.func @transform_5(%arg0: i32) -> (i32, i32) {
    %c0_i32 = arith.constant 0 : i32
    %c0_i32_0 = arith.constant 0 : i32
    %c0_i32_1 = arith.constant 0 : i32
    return %c0_i32, %c0_i32_0 : i32, i32
  }
  func.func @transform_6(%arg0: i32) -> (i32, i32) {
    %c0_i32 = arith.constant 0 : i32
    %c0_i32_0 = arith.constant 0 : i32
    %c0_i32_1 = arith.constant 0 : i32
    return %c0_i32, %c0_i32_0 : i32, i32
  }
  func.func @transform_7(%arg0: i32) -> (i32, i32) {
    %c0_i32 = arith.constant 0 : i32
    %c0_i32_0 = arith.constant 0 : i32
    return %arg0, %c0_i32 : i32, i32
  }
}

</mosaic_0001>

<bundles_post_ra>
// kernel: tpu_custom_call.1
= control target key start
LH: loop header
LB: loop body
LE: loop exit
PB: predicated region body
PF: predicated region fallthrough
CT: control target
= control target key end

     0   :  { %v1032_v0 = vmov 0.0   ;;  %vm1033_vm0 = vmmov 0   ;;  %vm81_vm1 = vcmask 130048   ;;  %vm320_vm2 = vcmask 261120   ;;  %s1496_s1 = inlined_call_operand.vmem [shape: bf16[16,32], index: 1, kind: input, shape index: {}]   ;;  %s1497_s0 = inlined_call_operand.vmem [shape: f32[208,16], index: 0, kind: input, shape index: {}]   ;;  %s1498_s3 = inlined_call_operand.vmem [shape: bf16[32,32], index: 3, kind: input, shape index: {}]   ;;  %s1499_s5 = inlined_call_operand.vmem [shape: bf16[32,8], index: 5, kind: input, shape index: {}]   ;;  %s1500_s2 = inlined_call_operand.vmem [shape: f32[1,32], index: 2, kind: input, shape index: {}]   ;;  %s1501_s4 = inlined_call_operand.vmem [shape: f32[1,32], index: 4, kind: input, shape index: {}]   ;;  %s1502_s6 = inlined_call_operand.vmem [shape: f32[1,8], index: 6, kind: input, shape index: {}]   ;;  %s1503_s7 = inlined_call_operand.vmem [shape: f32[208,8], index: 7, kind: output, shape index: {}]  }
   0x1   :  { %857 = vmatprep.subr.bf16.mxu0 %v1032_v0  ;;  %v1027_v1 = vld [vmem:[%s1496_s1] sm:$0xff]   ;;  %859 = vmatprep.mubr.msk.bf16.mxu0 %vm1033_vm0, %v1032_v0  ;;  %v28_v3 = vld [vmem:[%s1497_s0 + $0x8] sm:$0xff]  ;;  %v41_v5 = vld [vmem:[%s1497_s0 + $0x70] sm:$0xff]  ;;  %vm735_vm3 = vcmask 64512  }
   0x2   :  { %v27_v2 = vld [vmem:[%s1497_s0] sm:$0xff]  ;;  %1023 = vmatprep.subr.bf16.mxu1 %v1032_v0  ;;  %887 = vmatprep.mubr.msk.bf16.mxu1 %vm1033_vm0, %v1032_v0  ;;  %v29_v6 = vld [vmem:[%s1497_s0 + $0x10] sm:$0xff]  ;;  %v30_v7 = vld [vmem:[%s1497_s0 + $0x18] sm:$0xff] }
   0x3   :  { %858 = vmatpush3.bf16.msra.mxu0 %v1027_v1  ;;  %v56_v4 = vpack.c.bf16 %v28_v3, %v27_v2  ;;  %1024 = vmatpush3.bf16.msra.mxu1 %v1027_v1  ;;  %v42_v8 = vld [vmem:[%s1497_s0 + $0x78] sm:$0xff]  ;;  %v57_v10 = vpack.c.bf16 %v30_v7, %v29_v6  ;;  %v43_v11 = vld [vmem:[%s1497_s0 + $0x80] sm:$0xff]  ;;  %v44_v12 = vld [vmem:[%s1497_s0 + $0x88] sm:$0xff] }
   0x4   :  { %911 = vmatprep.subr.bf16.mxu1 %v1032_v0  ;;  %967 = vmatprep.subr.bf16.mxu0 %v1032_v0  ;;  %v63_v9 = vpack.c.bf16 %v42_v8, %v41_v5  ;;  %v1028_v13 = vld [vmem:[%s1498_s3] sm:$0xff]   ;;  %v1029_v14 = vld [vmem:[%s1498_s3 + $0x8] sm:$0xff]   ;;  %v64_v15 = vpack.c.bf16 %v44_v12, %v43_v11  ;;  %v45_v19 = vld [vmem:[%s1497_s0 + $0x90] sm:$0xff] }
   0x5   :  { %v31_v16 = vld [vmem:[%s1497_s0 + $0x20] sm:$0xff]  ;;  %v32_v17 = vld [vmem:[%s1497_s0 + $0x28] sm:$0xff]  ;;  %v46_v20 = vld [vmem:[%s1497_s0 + $0x98] sm:$0xff] }
   0x6   :  { %860 = vmatmul.mubr.msk.bf16.vlgmr.msra.gmra.mrb[0].mxu0 %vm81_vm1, %v56_v4  ;;  %888 = vmatmul.mubr.msk.bf16.vlgmr.msra.gmra.mrb[0].mxu1 %vm81_vm1, %v63_v9  ;;  %v58_v18 = vpack.c.bf16 %v32_v17, %v31_v16  ;;  %v65_v21 = vpack.c.bf16 %v46_v20, %v45_v19  ;;  %v33_v22 = vld [vmem:[%s1497_s0 + $0x30] sm:$0xff]  ;;  %v34_v23 = vld [vmem:[%s1497_s0 + $0x38] sm:$0xff]  ;;  %v47_v25 = vld [vmem:[%s1497_s0 + $0xa0] sm:$0xff] }
   0x7   :  { %863 = vmatprep.mubr.msk.bf16.mxu0 %vm1033_vm0, %v1032_v0  ;;  %891 = vmatprep.mubr.msk.bf16.mxu1 %vm1033_vm0, %v1032_v0  ;;  %v59_v24 = vpack.c.bf16 %v34_v23, %v33_v22  ;;  %v48_v26 = vld [vmem:[%s1497_s0 + $0xa8] sm:$0xff]  ;;  %v35_v28 = vld [vmem:[%s1497_s0 + $0x40] sm:$0xff]  ;;  %v49_v31 = vld [vmem:[%s1497_s0 + $0xb0] sm:$0xff] }
   0x8   :  { %912 = vmatpush3.bf16.msra.mxu1 %v1028_v13  ;;  %v66_v27 = vpack.c.bf16 %v48_v26, %v47_v25  ;;  %v36_v29 = vld [vmem:[%s1497_s0 + $0x48] sm:$0xff]  ;;  %v50_v32 = vld [vmem:[%s1497_s0 + $0xb8] sm:$0xff]  ;;  %v37_v34 = vld [vmem:[%s1497_s0 + $0x50] sm:$0xff] }
   0x9   :  { %913 = vmatprep.subr.bf16.mxu1 %v1032_v0  ;;  %v60_v30 = vpack.c.bf16 %v36_v29, %v35_v28  ;;  %v67_v33 = vpack.c.bf16 %v50_v32, %v49_v31  ;;  %v38_v35 = vld [vmem:[%s1497_s0 + $0x58] sm:$0xff]  ;;  %v51_v37 = vld [vmem:[%s1497_s0 + $0xc0] sm:$0xff]  ;;  %v52_v38 = vld [vmem:[%s1497_s0 + $0xc8] sm:$0xff] }
   0xa   :  { %v61_v36 = vpack.c.bf16 %v38_v35, %v37_v34  ;;  %v68_v39 = vpack.c.bf16 %v52_v38, %v51_v37  ;;  %v39_v40 = vld [vmem:[%s1497_s0 + $0x60] sm:$0xff]  ;;  %v40_v41 = vld [vmem:[%s1497_s0 + $0x68] sm:$0xff] }
   0xb   :  { %v62_v42 = vpack.c.bf16 %v40_v41, %v39_v40  ;;  %v1030_v43 = vld [vmem:[%s1499_s5] sm:$0xff]   ;;  %v1031_v44 = vld [vmem:[%s1499_s5 + $0x8] sm:$0xff]  }
   0xc   :  { %914 = vmatpush3.bf16.msra.mxu1 %v1029_v14  ;;  %968 = vmatpush3.bf16.msra.mxu0 %v1030_v43  ;;  %v1219_v45 = vld [vmem:[%s1500_s2] ss:$0 sm:$0xff] }
   0xd   :  { %969 = vmatprep.subr.bf16.mxu0 %v1032_v0 }
   0xe   :  { %864 = vmatmul.mubr.msk.bf16.gmra.mrb[4].mxu0 %vm81_vm1, %v57_v10  ;;  %892 = vmatmul.mubr.msk.bf16.gmra.mrb[4].mxu1 %vm81_vm1, %v64_v15 }
   0xf   :  { %867 = vmatprep.mubr.msk.bf16.mxu0 %vm1033_vm0, %v1032_v0  ;;  %895 = vmatprep.mubr.msk.bf16.mxu1 %vm1033_vm0, %v1032_v0 }
  0x10   :  { %970 = vmatpush3.bf16.msra.mxu0 %v1031_v44 }
  0x16   :  { %868 = vmatmul.mubr.msk.bf16.gmra.mrb[8].mxu0 %vm81_vm1, %v58_v18  ;;  %896 = vmatmul.mubr.msk.bf16.gmra.mrb[8].mxu1 %vm81_vm1, %v65_v21 }
  0x17   :  { %871 = vmatprep.mubr.msk.bf16.mxu0 %vm1033_vm0, %v1032_v0  ;;  %899 = vmatprep.mubr.msk.bf16.mxu1 %vm1033_vm0, %v1032_v0 }
  0x1e   :  { %872 = vmatmul.mubr.msk.bf16.gmra.mrb[12].mxu0 %vm81_vm1, %v59_v24  ;;  %900 = vmatmul.mubr.msk.bf16.gmra.mrb[12].mxu1 %vm81_vm1, %v66_v27 }
  0x1f   :  { %875 = vmatprep.mubr.msk.bf16.mxu0 %vm1033_vm0, %v1032_v0  ;;  %903 = vmatprep.mubr.msk.bf16.mxu1 %vm1033_vm0, %v1032_v0 }
  0x26   :  { %876 = vmatmul.mubr.msk.bf16.gmra.mrb[16].mxu0 %vm81_vm1, %v60_v30  ;;  %904 = vmatmul.mubr.msk.bf16.gmra.mrb[16].mxu1 %vm81_vm1, %v67_v33 }
  0x27   :  { %879 = vmatprep.mubr.msk.bf16.mxu0 %vm1033_vm0, %v1032_v0  ;;  %907 = vmatprep.mubr.msk.bf16.mxu1 %vm1033_vm0, %v1032_v0 }
  0x2e   :  { %880 = vmatmul.mubr.msk.bf16.gmra.mrb[20].mxu0 %vm81_vm1, %v61_v36  ;;  %908 = vmatmul.mubr.msk.bf16.gmra.mrb[20].mxu1 %vm81_vm1, %v68_v39 }
  0x2f   :  { %883 = vmatprep.mubr.msk.bf16.mxu0 %vm1033_vm0, %v1032_v0  ;;  %915 = vmatprep.mubr.msk.bf16.mxu1 %vm1033_vm0, %v1032_v0 }
  0x36   :  { %884 = vmatmul.mubr.msk.bf16.gmra.mrb[24].mxu0 %vm81_vm1, %v62_v42 }
  0x37   :  { %971 = vmatprep.mubr.msk.bf16.mxu0 %vm1033_vm0, %v1032_v0 }
  0xd9   :  { %v155_v46 = vpop.f32.mrb[0].mxu0  ;;  %v211_v52 = vpop.f32.mrb[0].mxu1 }
  0xda   :  { %v156_v47 = vadd.f32 %v1219_v45, %v155_v46  ;;  %v861_v48 = vpop.f32.mrb[1].mxu0  ;;  %v212_v55 = vadd.f32 %v1219_v45, %v211_v52  ;;  %v889_v56 = vpop.f32.mrb[1].mxu1 }
  0xdb   :  { %v158_v49 = vpop.f32.mrb[2].mxu0  ;;  %v214_v57 = vpop.f32.mrb[2].mxu1 }
  0xdc   :  { %v159_v50 = vadd.f32 %v1219_v45, %v158_v49  ;;  %v862_v51 = vpop.f32.mrb[3].mxu0  ;;  %v258_v53 = vmax.f32 %v156_v47, 0.0  ;;  %v272_v59 = vmax.f32 %v212_v55, 0.0  ;;  %v215_v60 = vadd.f32 %v1219_v45, %v214_v57  ;;  %v890_v61 = vpop.f32.mrb[3].mxu1 }
  0xde   :  { %v259_v54 = vmax.f32 %v159_v50, 0.0  ;;  %v273_v2 = vmax.f32 %v215_v60, 0.0 }
  0xe0   :  { %v289_v58 = vpack.c.bf16 %v259_v54, %v258_v53  ;;  %v1230_v6 = vpack.c.bf16 %v273_v2, %v272_v59 }
  0xe1   :  { %v163_v62 = vpop.f32.mrb[4].mxu0  ;;  %v219_v7 = vpop.f32.mrb[4].mxu1 }
  0xe2   :  { %v164_v63 = vadd.f32 %v1219_v45, %v163_v62  ;;  %v865_v1 = vpop.f32.mrb[5].mxu0  ;;  %916 = vmatmul.mubr.msk.bf16.vlgmr.msra.gmra.mrb[24].mxu1 %vm320_vm2, %v289_v58  ;;  %v220_v10 = vadd.f32 %v1219_v45, %v219_v7  ;;  %v893_v11 = vpop.f32.mrb[5].mxu1 }
  0xe3   :  { %v166_v3 = vpop.f32.mrb[6].mxu0  ;;  %919 = vmatprep.mubr.msk.bf16.mxu1 %vm1033_vm0, %v1032_v0  ;;  %v222_v12 = vpop.f32.mrb[6].mxu1 }
  0xe4   :  { %v167_v4 = vadd.f32 %v1219_v45, %v166_v3  ;;  %v866_v5 = vpop.f32.mrb[7].mxu0  ;;  %v260_v8 = vmax.f32 %v164_v63, 0.0  ;;  %v274_v14 = vmax.f32 %v220_v10, 0.0  ;;  %v223_v15 = vadd.f32 %v1219_v45, %v222_v12  ;;  %v894_v16 = vpop.f32.mrb[7].mxu1 }
  0xe6   :  { %v261_v9 = vmax.f32 %v167_v4, 0.0  ;;  %v275_v20 = vmax.f32 %v223_v15, 0.0 }
  0xe8   :  { %v290_v13 = vpack.c.bf16 %v261_v9, %v260_v8  ;;  %v1239_v24 = vpack.c.bf16 %v275_v20, %v274_v14 }
  0xe9   :  { %v171_v17 = vpop.f32.mrb[8].mxu0  ;;  %v227_v25 = vpop.f32.mrb[8].mxu1 }
  0xea   :  { %v172_v18 = vadd.f32 %v1219_v45, %v171_v17  ;;  %v869_v19 = vpop.f32.mrb[9].mxu0  ;;  %920 = vmatmul.mubr.msk.bf16.gmra.mrb[28].mxu1 %vm320_vm2, %v290_v13  ;;  %v228_v28 = vadd.f32 %v1219_v45, %v227_v25  ;;  %v897_v29 = vpop.f32.mrb[9].mxu1 }
  0xeb   :  { %v174_v21 = vpop.f32.mrb[10].mxu0  ;;  %923 = vmatprep.mubr.msk.bf16.mxu1 %vm1033_vm0, %v1032_v0  ;;  %v230_v30 = vpop.f32.mrb[10].mxu1 }
  0xec   :  { %v175_v22 = vadd.f32 %v1219_v45, %v174_v21  ;;  %v870_v23 = vpop.f32.mrb[11].mxu0  ;;  %v262_v26 = vmax.f32 %v172_v18, 0.0  ;;  %v276_v32 = vmax.f32 %v228_v28, 0.0  ;;  %v231_v33 = vadd.f32 %v1219_v45, %v230_v30  ;;  %v898_v34 = vpop.f32.mrb[11].mxu1 }
  0xee   :  { %v263_v27 = vmax.f32 %v175_v22, 0.0  ;;  %v277_v38 = vmax.f32 %v231_v33, 0.0 }
  0xf0   :  { %v291_v31 = vpack.c.bf16 %v263_v27, %v262_v26  ;;  %v1248_v42 = vpack.c.bf16 %v277_v38, %v276_v32 }
  0xf1   :  { %v179_v35 = vpop.f32.mrb[12].mxu0  ;;  %v235_v43 = vpop.f32.mrb[12].mxu1 }
  0xf2   :  { %v180_v36 = vadd.f32 %v1219_v45, %v179_v35  ;;  %v873_v37 = vpop.f32.mrb[13].mxu0  ;;  %924 = vmatmul.mubr.msk.bf16.gmra.mrb[32].mxu1 %vm320_vm2, %v291_v31  ;;  %v236_v47 = vadd.f32 %v1219_v45, %v235_v43  ;;  %v901_v48 = vpop.f32.mrb[13].mxu1 }
  0xf3   :  { %v182_v39 = vpop.f32.mrb[14].mxu0  ;;  %927 = vmatprep.mubr.msk.bf16.mxu1 %vm1033_vm0, %v1032_v0  ;;  %v238_v49 = vpop.f32.mrb[14].mxu1 }
  0xf4   :  { %v183_v40 = vadd.f32 %v1219_v45, %v182_v39  ;;  %v874_v41 = vpop.f32.mrb[15].mxu0  ;;  %v264_v44 = vmax.f32 %v180_v36, 0.0  ;;  %v278_v51 = vmax.f32 %v236_v47, 0.0  ;;  %v239_v52 = vadd.f32 %v1219_v45, %v238_v49  ;;  %v902_v53 = vpop.f32.mrb[15].mxu1 }
  0xf6   :  { %v265_v46 = vmax.f32 %v183_v40, 0.0  ;;  %v279_v57 = vmax.f32 %v239_v52, 0.0 }
  0xf8   :  { %v292_v50 = vpack.c.bf16 %v265_v46, %v264_v44  ;;  %v299_v61 = vpack.c.bf16 %v279_v57, %v278_v51 }
  0xf9   :  { %v187_v54 = vpop.f32.mrb[16].mxu0  ;;  %v243_v62 = vpop.f32.mrb[16].mxu1 }
  0xfa   :  { %v188_v55 = vadd.f32 %v1219_v45, %v187_v54  ;;  %v877_v56 = vpop.f32.mrb[17].mxu0  ;;  %928 = vmatmul.mubr.msk.bf16.gmra.mrb[36].mxu1 %vm320_vm2, %v292_v50  ;;  %v244_v2 = vadd.f32 %v1219_v45, %v243_v62  ;;  %v905_v3 = vpop.f32.mrb[17].mxu1 }
  0xfb   :  { %v190_v58 = vpop.f32.mrb[18].mxu0  ;;  %931 = vmatprep.mubr.msk.bf16.mxu1 %vm1033_vm0, %v1032_v0  ;;  %v246_v4 = vpop.f32.mrb[18].mxu1 }
  0xfc   :  { %v191_v59 = vadd.f32 %v1219_v45, %v190_v58  ;;  %v878_v60 = vpop.f32.mrb[19].mxu0  ;;  %v266_v63 = vmax.f32 %v188_v55, 0.0  ;;  %v280_v7 = vmax.f32 %v244_v2, 0.0  ;;  %v247_v8 = vadd.f32 %v1219_v45, %v246_v4  ;;  %v906_v9 = vpop.f32.mrb[19].mxu1 }
  0xfe   :  { %v267_v1 = vmax.f32 %v191_v59, 0.0  ;;  %v281_v13 = vmax.f32 %v247_v8, 0.0 }
 0x100   :  { %v293_v5 = vpack.c.bf16 %v267_v1, %v266_v63  ;;  %v300_v17 = vpack.c.bf16 %v281_v13, %v280_v7 }
 0x101   :  { %v195_v10 = vpop.f32.mrb[20].mxu0  ;;  %v251_v18 = vpop.f32.mrb[20].mxu1 }
 0x102   :  { %v196_v11 = vadd.f32 %v1219_v45, %v195_v10  ;;  %v881_v12 = vpop.f32.mrb[21].mxu0  ;;  %932 = vmatmul.mubr.msk.bf16.gmra.mrb[40].mxu1 %vm320_vm2, %v293_v5  ;;  %v252_v21 = vadd.f32 %v1219_v45, %v251_v18  ;;  %v909_v22 = vpop.f32.mrb[21].mxu1 }
 0x103   :  { %v198_v14 = vpop.f32.mrb[22].mxu0  ;;  %935 = vmatprep.mubr.msk.bf16.mxu1 %vm1033_vm0, %v1032_v0  ;;  %v254_v23 = vpop.f32.mrb[22].mxu1 }
 0x104   :  { %v199_v15 = vadd.f32 %v1219_v45, %v198_v14  ;;  %v882_v16 = vpop.f32.mrb[23].mxu0  ;;  %v268_v19 = vmax.f32 %v196_v11, 0.0  ;;  %v282_v26 = vmax.f32 %v252_v21, 0.0  ;;  %v255_v27 = vadd.f32 %v1219_v45, %v254_v23  ;;  %v910_v28 = vpop.f32.mrb[23].mxu1 }
 0x106   :  { %v269_v20 = vmax.f32 %v199_v15, 0.0  ;;  %v283_v32 = vmax.f32 %v255_v27, 0.0 }
 0x108   :  { %v294_v25 = vpack.c.bf16 %v269_v20, %v268_v19  ;;  %v301_v36 = vpack.c.bf16 %v283_v32, %v282_v26 }
 0x109   :  { %v203_v29 = vpop.f32.mrb[24].mxu0 }
 0x10a   :  { %v204_v30 = vadd.f32 %v1219_v45, %v203_v29  ;;  %v885_v31 = vpop.f32.mrb[25].mxu0  ;;  %936 = vmatmul.mubr.msk.bf16.gmra.mrb[44].mxu1 %vm320_vm2, %v294_v25 }
 0x10b   :  { %v206_v33 = vpop.f32.mrb[26].mxu0  ;;  %939 = vmatprep.mubr.msk.bf16.mxu1 %vm1033_vm0, %v1032_v0 }
 0x10c   :  { %v207_v34 = vadd.f32 %v1219_v45, %v206_v33  ;;  %v886_v35 = vpop.f32.mrb[27].mxu0  ;;  %v270_v37 = vmax.f32 %v204_v30, 0.0  ;;  %v1296_v45 = vld [vmem:[%s1501_s4] ss:$0 sm:$0xff] }
 0x10e   :  { %v271_v38 = vmax.f32 %v207_v34, 0.0 }
 0x110   :  { %v295_v39 = vpack.c.bf16 %v271_v38, %v270_v37 }
 0x112   :  { %940 = vmatmul.mubr.msk.bf16.gmra.mrb[48].mxu1 %vm320_vm2, %v295_v39 }
 0x113   :  { %943 = vmatprep.mubr.msk.bf16.mxu1 %vm1033_vm0, %v1032_v0 }
 0x11a   :  { %944 = vmatmul.mubr.msk.bf16.gmra.mrb[52].mxu1 %vm320_vm2, %v1230_v6 }
 0x11b   :  { %947 = vmatprep.mubr.msk.bf16.mxu1 %vm1033_vm0, %v1032_v0 }
 0x122   :  { %948 = vmatmul.mubr.msk.bf16.gmra.mrb[56].mxu1 %vm320_vm2, %v1239_v24 }
 0x123   :  { %951 = vmatprep.mubr.msk.bf16.mxu1 %vm1033_vm0, %v1032_v0 }
 0x12a   :  { %952 = vmatmul.mubr.msk.bf16.gmra.mrb[60].mxu1 %vm320_vm2, %v1248_v42 }
 0x12b   :  { %955 = vmatprep.mubr.msk.bf16.mxu1 %vm1033_vm0, %v1032_v0 }
 0x132   :  { %956 = vmatmul.mubr.msk.bf16.gmra.mrb[64].mxu1 %vm320_vm2, %v299_v61 }
 0x133   :  { %959 = vmatprep.mubr.msk.bf16.mxu1 %vm1033_vm0, %v1032_v0 }
 0x13a   :  { %960 = vmatmul.mubr.msk.bf16.gmra.mrb[68].mxu1 %vm320_vm2, %v300_v17 }
 0x13b   :  { %963 = vmatprep.mubr.msk.bf16.mxu1 %vm1033_vm0, %v1032_v0 }
 0x142   :  { %964 = vmatmul.mubr.msk.bf16.gmra.mrb[72].mxu1 %vm320_vm2, %v301_v36 }
 0x1b5   :  { %v394_v6 = vpop.f32.mrb[24].mxu1 }
 0x1b6   :  { %v395_v24 = vadd.f32 %v1296_v45, %v394_v6  ;;  %v917_v40 = vpop.f32.mrb[25].mxu1 }
 0x1b7   :  { %v397_v41 = vpop.f32.mrb[26].mxu1 }
 0x1b8   :  { %v398_v42 = vadd.f32 %v1296_v45, %v397_v41  ;;  %v918_v43 = vpop.f32.mrb[27].mxu1  ;;  %v497_v44 = vmax.f32 %v395_v24, 0.0 }
 0x1ba   :  { %v498_v46 = vmax.f32 %v398_v42, 0.0 }
 0x1bc   :  { %v528_v47 = vpack.c.bf16 %v498_v46, %v497_v44 }
 0x1bd   :  { %v402_v48 = vpop.f32.mrb[28].mxu1 }
 0x1be   :  { %v403_v49 = vadd.f32 %v1296_v45, %v402_v48  ;;  %v921_v50 = vpop.f32.mrb[29].mxu1  ;;  %972 = vmatmul.mubr.msk.bf16.vlgmr.msra.gmra.mrb[28].mxu0 %vm320_vm2, %v528_v47 }
 0x1bf   :  { %v405_v51 = vpop.f32.mrb[30].mxu1  ;;  %975 = vmatprep.mubr.msk.bf16.mxu0 %vm1033_vm0, %v1032_v0 }
 0x1c0   :  { %v406_v52 = vadd.f32 %v1296_v45, %v405_v51  ;;  %v922_v53 = vpop.f32.mrb[31].mxu1  ;;  %v499_v54 = vmax.f32 %v403_v49, 0.0 }
 0x1c2   :  { %v500_v55 = vmax.f32 %v406_v52, 0.0 }
 0x1c4   :  { %v529_v56 = vpack.c.bf16 %v500_v55, %v499_v54 }
 0x1c5   :  { %v410_v57 = vpop.f32.mrb[32].mxu1 }
 0x1c6   :  { %v411_v58 = vadd.f32 %v1296_v45, %v410_v57  ;;  %v925_v59 = vpop.f32.mrb[33].mxu1  ;;  %976 = vmatmul.mubr.msk.bf16.gmra.mrb[32].mxu0 %vm320_vm2, %v529_v56 }
 0x1c7   :  { %v413_v60 = vpop.f32.mrb[34].mxu1  ;;  %979 = vmatprep.mubr.msk.bf16.mxu0 %vm1033_vm0, %v1032_v0 }
 0x1c8   :  { %v414_v61 = vadd.f32 %v1296_v45, %v413_v60  ;;  %v926_v62 = vpop.f32.mrb[35].mxu1  ;;  %v501_v63 = vmax.f32 %v411_v58, 0.0 }
 0x1ca   :  { %v502_v1 = vmax.f32 %v414_v61, 0.0 }
 0x1cc   :  { %v530_v2 = vpack.c.bf16 %v502_v1, %v501_v63 }
 0x1cd   :  { %v418_v3 = vpop.f32.mrb[36].mxu1 }
 0x1ce   :  { %v419_v4 = vadd.f32 %v1296_v45, %v418_v3  ;;  %v929_v5 = vpop.f32.mrb[37].mxu1  ;;  %980 = vmatmul.mubr.msk.bf16.gmra.mrb[36].mxu0 %vm320_vm2, %v530_v2 }
 0x1cf   :  { %v421_v7 = vpop.f32.mrb[38].mxu1  ;;  %983 = vmatprep.mubr.msk.bf16.mxu0 %vm1033_vm0, %v1032_v0 }
 0x1d0   :  { %v422_v8 = vadd.f32 %v1296_v45, %v421_v7  ;;  %v930_v9 = vpop.f32.mrb[39].mxu1  ;;  %v503_v10 = vmax.f32 %v419_v4, 0.0 }
 0x1d2   :  { %v504_v11 = vmax.f32 %v422_v8, 0.0 }
 0x1d4   :  { %v531_v12 = vpack.c.bf16 %v504_v11, %v503_v10 }
 0x1d5   :  { %v426_v13 = vpop.f32.mrb[40].mxu1 }
 0x1d6   :  { %v427_v14 = vadd.f32 %v1296_v45, %v426_v13  ;;  %v933_v15 = vpop.f32.mrb[41].mxu1  ;;  %984 = vmatmul.mubr.msk.bf16.gmra.mrb[40].mxu0 %vm320_vm2, %v531_v12 }
 0x1d7   :  { %v429_v16 = vpop.f32.mrb[42].mxu1  ;;  %987 = vmatprep.mubr.msk.bf16.mxu0 %vm1033_vm0, %v1032_v0 }
 0x1d8   :  { %v430_v17 = vadd.f32 %v1296_v45, %v429_v16  ;;  %v934_v18 = vpop.f32.mrb[43].mxu1  ;;  %v505_v19 = vmax.f32 %v427_v14, 0.0 }
 0x1da   :  { %v506_v20 = vmax.f32 %v430_v17, 0.0 }
 0x1dc   :  { %v532_v21 = vpack.c.bf16 %v506_v20, %v505_v19 }
 0x1dd   :  { %v434_v22 = vpop.f32.mrb[44].mxu1 }
 0x1de   :  { %v435_v23 = vadd.f32 %v1296_v45, %v434_v22  ;;  %v937_v25 = vpop.f32.mrb[45].mxu1  ;;  %988 = vmatmul.mubr.msk.bf16.gmra.mrb[44].mxu0 %vm320_vm2, %v532_v21 }
 0x1df   :  { %v437_v26 = vpop.f32.mrb[46].mxu1  ;;  %991 = vmatprep.mubr.msk.bf16.mxu0 %vm1033_vm0, %v1032_v0 }
 0x1e0   :  { %v438_v27 = vadd.f32 %v1296_v45, %v437_v26  ;;  %v938_v28 = vpop.f32.mrb[47].mxu1  ;;  %v507_v29 = vmax.f32 %v435_v23, 0.0 }
 0x1e2   :  { %v508_v30 = vmax.f32 %v438_v27, 0.0 }
 0x1e4   :  { %v533_v31 = vpack.c.bf16 %v508_v30, %v507_v29 }
 0x1e5   :  { %v442_v32 = vpop.f32.mrb[48].mxu1 }
 0x1e6   :  { %v443_v33 = vadd.f32 %v1296_v45, %v442_v32  ;;  %v941_v34 = vpop.f32.mrb[49].mxu1  ;;  %992 = vmatmul.mubr.msk.bf16.gmra.mrb[48].mxu0 %vm320_vm2, %v533_v31 }
 0x1e7   :  { %v445_v35 = vpop.f32.mrb[50].mxu1  ;;  %995 = vmatprep.mubr.msk.bf16.mxu0 %vm1033_vm0, %v1032_v0 }
 0x1e8   :  { %v446_v36 = vadd.f32 %v1296_v45, %v445_v35  ;;  %v942_v37 = vpop.f32.mrb[51].mxu1  ;;  %v509_v38 = vmax.f32 %v443_v33, 0.0  ;;  %v1364_v33 = vld [vmem:[%s1502_s6] ss:$0 sm:$0xff] }
 0x1ea   :  { %v510_v39 = vmax.f32 %v446_v36, 0.0 }
 0x1ec   :  { %v534_v6 = vpack.c.bf16 %v510_v39, %v509_v38 }
 0x1ed   :  { %v450_v24 = vpop.f32.mrb[52].mxu1 }
 0x1ee   :  { %v451_v40 = vadd.f32 %v1296_v45, %v450_v24  ;;  %v945_v41 = vpop.f32.mrb[53].mxu1  ;;  %996 = vmatmul.mubr.msk.bf16.gmra.mrb[52].mxu0 %vm320_vm2, %v534_v6 }
 0x1ef   :  { %v453_v42 = vpop.f32.mrb[54].mxu1  ;;  %999 = vmatprep.mubr.msk.bf16.mxu0 %vm1033_vm0, %v1032_v0 }
 0x1f0   :  { %v454_v43 = vadd.f32 %v1296_v45, %v453_v42  ;;  %v946_v44 = vpop.f32.mrb[55].mxu1  ;;  %v511_v46 = vmax.f32 %v451_v40, 0.0 }
 0x1f2   :  { %v512_v47 = vmax.f32 %v454_v43, 0.0 }
 0x1f4   :  { %v535_v48 = vpack.c.bf16 %v512_v47, %v511_v46 }
 0x1f5   :  { %v458_v49 = vpop.f32.mrb[56].mxu1 }
 0x1f6   :  { %v459_v50 = vadd.f32 %v1296_v45, %v458_v49  ;;  %v949_v51 = vpop.f32.mrb[57].mxu1  ;;  %1000 = vmatmul.mubr.msk.bf16.gmra.mrb[56].mxu0 %vm320_vm2, %v535_v48 }
 0x1f7   :  { %v461_v52 = vpop.f32.mrb[58].mxu1  ;;  %1003 = vmatprep.mubr.msk.bf16.mxu0 %vm1033_vm0, %v1032_v0 }
 0x1f8   :  { %v462_v53 = vadd.f32 %v1296_v45, %v461_v52  ;;  %v950_v54 = vpop.f32.mrb[59].mxu1  ;;  %v513_v55 = vmax.f32 %v459_v50, 0.0 }
 0x1fa   :  { %v514_v56 = vmax.f32 %v462_v53, 0.0 }
 0x1fc   :  { %v536_v57 = vpack.c.bf16 %v514_v56, %v513_v55 }
 0x1fd   :  { %v466_v58 = vpop.f32.mrb[60].mxu1 }
 0x1fe   :  { %v467_v59 = vadd.f32 %v1296_v45, %v466_v58  ;;  %v953_v60 = vpop.f32.mrb[61].mxu1  ;;  %1004 = vmatmul.mubr.msk.bf16.gmra.mrb[60].mxu0 %vm320_vm2, %v536_v57 }
 0x1ff   :  { %v469_v61 = vpop.f32.mrb[62].mxu1  ;;  %1007 = vmatprep.mubr.msk.bf16.mxu0 %vm1033_vm0, %v1032_v0 }
 0x200   :  { %v470_v62 = vadd.f32 %v1296_v45, %v469_v61  ;;  %v954_v63 = vpop.f32.mrb[63].mxu1  ;;  %v515_v1 = vmax.f32 %v467_v59, 0.0 }
 0x202   :  { %v516_v2 = vmax.f32 %v470_v62, 0.0 }
 0x204   :  { %v537_v3 = vpack.c.bf16 %v516_v2, %v515_v1 }
 0x205   :  { %v474_v4 = vpop.f32.mrb[64].mxu1 }
 0x206   :  { %v475_v5 = vadd.f32 %v1296_v45, %v474_v4  ;;  %v957_v7 = vpop.f32.mrb[65].mxu1  ;;  %1008 = vmatmul.mubr.msk.bf16.gmra.mrb[64].mxu0 %vm320_vm2, %v537_v3 }
 0x207   :  { %v477_v8 = vpop.f32.mrb[66].mxu1  ;;  %1011 = vmatprep.mubr.msk.bf16.mxu0 %vm1033_vm0, %v1032_v0 }
 0x208   :  { %v478_v9 = vadd.f32 %v1296_v45, %v477_v8  ;;  %v958_v10 = vpop.f32.mrb[67].mxu1  ;;  %v517_v11 = vmax.f32 %v475_v5, 0.0 }
 0x20a   :  { %v518_v12 = vmax.f32 %v478_v9, 0.0 }
 0x20c   :  { %v538_v13 = vpack.c.bf16 %v518_v12, %v517_v11 }
 0x20d   :  { %v482_v14 = vpop.f32.mrb[68].mxu1 }
 0x20e   :  { %v483_v15 = vadd.f32 %v1296_v45, %v482_v14  ;;  %v961_v16 = vpop.f32.mrb[69].mxu1  ;;  %1012 = vmatmul.mubr.msk.bf16.gmra.mrb[68].mxu0 %vm320_vm2, %v538_v13 }
 0x20f   :  { %v485_v17 = vpop.f32.mrb[70].mxu1  ;;  %1015 = vmatprep.mubr.msk.bf16.mxu0 %vm1033_vm0, %v1032_v0 }
 0x210   :  { %v486_v18 = vadd.f32 %v1296_v45, %v485_v17  ;;  %v962_v19 = vpop.f32.mrb[71].mxu1  ;;  %v519_v20 = vmax.f32 %v483_v15, 0.0 }
 0x212   :  { %v520_v21 = vmax.f32 %v486_v18, 0.0 }
 0x214   :  { %v539_v22 = vpack.c.bf16 %v520_v21, %v519_v20 }
 0x215   :  { %v490_v23 = vpop.f32.mrb[72].mxu1 }
 0x216   :  { %v491_v25 = vadd.f32 %v1296_v45, %v490_v23  ;;  %v965_v26 = vpop.f32.mrb[73].mxu1  ;;  %1016 = vmatmul.mubr.msk.bf16.gmra.mrb[72].mxu0 %vm320_vm2, %v539_v22 }
 0x217   :  { %v493_v27 = vpop.f32.mrb[74].mxu1  ;;  %1019 = vmatprep.mubr.msk.bf16.mxu0 %vm1033_vm0, %v1032_v0 }
 0x218   :  { %v494_v28 = vadd.f32 %v1296_v45, %v493_v27  ;;  %v966_v29 = vpop.f32.mrb[75].mxu1  ;;  %v521_v30 = vmax.f32 %v491_v25, 0.0 }
 0x21a   :  { %v522_v31 = vmax.f32 %v494_v28, 0.0 }
 0x21c   :  { %v540_v32 = vpack.c.bf16 %v522_v31, %v521_v30 }
 0x21e   :  { %1020 = vmatmul.mubr.msk.bf16.gmra.mrb[76].mxu0 %vm320_vm2, %v540_v32 }
 0x291   :  { %v632_v34 = vpop.f32.mrb[28].mxu0 }
 0x292   :  { %v633_v35 = vadd.f32 %v1364_v33, %v632_v34  ;;  %v973_v36 = vpop.f32.mrb[29].mxu0 }
 0x293   :  { %v635_v37 = vpop.f32.mrb[30].mxu0 }
 0x294   :  { %736 = vst.msk [vmem:[%s1503_s7] sm:$0xff] %vm735_vm3, %v633_v35  ;;  %v636_v0 = vadd.f32 %v1364_v33, %v635_v37  ;;  %v974_v45 = vpop.f32.mrb[31].mxu0 }
 0x296   :  { %737 = vst.msk [vmem:[%s1503_s7 + $0x8] sm:$0xff] %vm735_vm3, %v636_v0 }
 0x299   :  { %v640_v38 = vpop.f32.mrb[32].mxu0 }
 0x29a   :  { %v641_v39 = vadd.f32 %v1364_v33, %v640_v38  ;;  %v977_v6 = vpop.f32.mrb[33].mxu0 }
 0x29b   :  { %v643_v24 = vpop.f32.mrb[34].mxu0 }
 0x29c   :  { %738 = vst.msk [vmem:[%s1503_s7 + $0x10] sm:$0xff] %vm735_vm3, %v641_v39  ;;  %v644_v40 = vadd.f32 %v1364_v33, %v643_v24  ;;  %v978_v41 = vpop.f32.mrb[35].mxu0 }
 0x29e   :  { %739 = vst.msk [vmem:[%s1503_s7 + $0x18] sm:$0xff] %vm735_vm3, %v644_v40 }
 0x2a1   :  { %v648_v42 = vpop.f32.mrb[36].mxu0 }
 0x2a2   :  { %v649_v43 = vadd.f32 %v1364_v33, %v648_v42  ;;  %v981_v44 = vpop.f32.mrb[37].mxu0 }
 0x2a3   :  { %v651_v46 = vpop.f32.mrb[38].mxu0 }
 0x2a4   :  { %740 = vst.msk [vmem:[%s1503_s7 + $0x20] sm:$0xff] %vm735_vm3, %v649_v43  ;;  %v652_v47 = vadd.f32 %v1364_v33, %v651_v46  ;;  %v982_v48 = vpop.f32.mrb[39].mxu0 }
 0x2a6   :  { %741 = vst.msk [vmem:[%s1503_s7 + $0x28] sm:$0xff] %vm735_vm3, %v652_v47 }
 0x2a9   :  { %v656_v49 = vpop.f32.mrb[40].mxu0 }
 0x2aa   :  { %v657_v50 = vadd.f32 %v1364_v33, %v656_v49  ;;  %v985_v51 = vpop.f32.mrb[41].mxu0 }
 0x2ab   :  { %v659_v52 = vpop.f32.mrb[42].mxu0 }
 0x2ac   :  { %742 = vst.msk [vmem:[%s1503_s7 + $0x30] sm:$0xff] %vm735_vm3, %v657_v50  ;;  %v660_v53 = vadd.f32 %v1364_v33, %v659_v52  ;;  %v986_v54 = vpop.f32.mrb[43].mxu0 }
 0x2ae   :  { %743 = vst.msk [vmem:[%s1503_s7 + $0x38] sm:$0xff] %vm735_vm3, %v660_v53 }
 0x2b1   :  { %v664_v55 = vpop.f32.mrb[44].mxu0 }
 0x2b2   :  { %v665_v56 = vadd.f32 %v1364_v33, %v664_v55  ;;  %v989_v57 = vpop.f32.mrb[45].mxu0 }
 0x2b3   :  { %v667_v58 = vpop.f32.mrb[46].mxu0 }
 0x2b4   :  { %744 = vst.msk [vmem:[%s1503_s7 + $0x40] sm:$0xff] %vm735_vm3, %v665_v56  ;;  %v668_v59 = vadd.f32 %v1364_v33, %v667_v58  ;;  %v990_v60 = vpop.f32.mrb[47].mxu0 }
 0x2b6   :  { %745 = vst.msk [vmem:[%s1503_s7 + $0x48] sm:$0xff] %vm735_vm3, %v668_v59 }
 0x2b9   :  { %v672_v61 = vpop.f32.mrb[48].mxu0 }
 0x2ba   :  { %v673_v62 = vadd.f32 %v1364_v33, %v672_v61  ;;  %v993_v63 = vpop.f32.mrb[49].mxu0 }
 0x2bb   :  { %v675_v1 = vpop.f32.mrb[50].mxu0 }
 0x2bc   :  { %746 = vst.msk [vmem:[%s1503_s7 + $0x50] sm:$0xff] %vm735_vm3, %v673_v62  ;;  %v676_v2 = vadd.f32 %v1364_v33, %v675_v1  ;;  %v994_v3 = vpop.f32.mrb[51].mxu0 }
 0x2be   :  { %747 = vst.msk [vmem:[%s1503_s7 + $0x58] sm:$0xff] %vm735_vm3, %v676_v2 }
 0x2c1   :  { %v680_v4 = vpop.f32.mrb[52].mxu0 }
 0x2c2   :  { %v681_v5 = vadd.f32 %v1364_v33, %v680_v4  ;;  %v997_v7 = vpop.f32.mrb[53].mxu0 }
 0x2c3   :  { %v683_v8 = vpop.f32.mrb[54].mxu0 }
 0x2c4   :  { %748 = vst.msk [vmem:[%s1503_s7 + $0x60] sm:$0xff] %vm735_vm3, %v681_v5  ;;  %v684_v9 = vadd.f32 %v1364_v33, %v683_v8  ;;  %v998_v10 = vpop.f32.mrb[55].mxu0 }
 0x2c6   :  { %749 = vst.msk [vmem:[%s1503_s7 + $0x68] sm:$0xff] %vm735_vm3, %v684_v9 }
 0x2c9   :  { %v688_v11 = vpop.f32.mrb[56].mxu0 }
 0x2ca   :  { %v689_v12 = vadd.f32 %v1364_v33, %v688_v11  ;;  %v1001_v13 = vpop.f32.mrb[57].mxu0 }
 0x2cb   :  { %v691_v14 = vpop.f32.mrb[58].mxu0 }
 0x2cc   :  { %750 = vst.msk [vmem:[%s1503_s7 + $0x70] sm:$0xff] %vm735_vm3, %v689_v12  ;;  %v692_v15 = vadd.f32 %v1364_v33, %v691_v14  ;;  %v1002_v16 = vpop.f32.mrb[59].mxu0 }
 0x2ce   :  { %751 = vst.msk [vmem:[%s1503_s7 + $0x78] sm:$0xff] %vm735_vm3, %v692_v15 }
 0x2d1   :  { %v696_v17 = vpop.f32.mrb[60].mxu0 }
 0x2d2   :  { %v697_v18 = vadd.f32 %v1364_v33, %v696_v17  ;;  %v1005_v19 = vpop.f32.mrb[61].mxu0 }
 0x2d3   :  { %v699_v20 = vpop.f32.mrb[62].mxu0 }
 0x2d4   :  { %752 = vst.msk [vmem:[%s1503_s7 + $0x80] sm:$0xff] %vm735_vm3, %v697_v18  ;;  %v700_v21 = vadd.f32 %v1364_v33, %v699_v20  ;;  %v1006_v22 = vpop.f32.mrb[63].mxu0 }
 0x2d6   :  { %753 = vst.msk [vmem:[%s1503_s7 + $0x88] sm:$0xff] %vm735_vm3, %v700_v21 }
 0x2d9   :  { %v704_v23 = vpop.f32.mrb[64].mxu0 }
 0x2da   :  { %v705_v25 = vadd.f32 %v1364_v33, %v704_v23  ;;  %v1009_v26 = vpop.f32.mrb[65].mxu0 }
 0x2db   :  { %v707_v27 = vpop.f32.mrb[66].mxu0 }
 0x2dc   :  { %754 = vst.msk [vmem:[%s1503_s7 + $0x90] sm:$0xff] %vm735_vm3, %v705_v25  ;;  %v708_v28 = vadd.f32 %v1364_v33, %v707_v27  ;;  %v1010_v29 = vpop.f32.mrb[67].mxu0 }
 0x2de   :  { %755 = vst.msk [vmem:[%s1503_s7 + $0x98] sm:$0xff] %vm735_vm3, %v708_v28 }
 0x2e1   :  { %v712_v30 = vpop.f32.mrb[68].mxu0 }
 0x2e2   :  { %v713_v31 = vadd.f32 %v1364_v33, %v712_v30  ;;  %v1013_v32 = vpop.f32.mrb[69].mxu0 }
 0x2e3   :  { %v715_v34 = vpop.f32.mrb[70].mxu0 }
 0x2e4   :  { %756 = vst.msk [vmem:[%s1503_s7 + $0xa0] sm:$0xff] %vm735_vm3, %v713_v31  ;;  %v716_v35 = vadd.f32 %v1364_v33, %v715_v34  ;;  %v1014_v36 = vpop.f32.mrb[71].mxu0 }
 0x2e6   :  { %757 = vst.msk [vmem:[%s1503_s7 + $0xa8] sm:$0xff] %vm735_vm3, %v716_v35 }
 0x2e9   :  { %v720_v37 = vpop.f32.mrb[72].mxu0 }
 0x2ea   :  { %v721_v0 = vadd.f32 %v1364_v33, %v720_v37  ;;  %v1017_v45 = vpop.f32.mrb[73].mxu0 }
 0x2eb   :  { %v723_v38 = vpop.f32.mrb[74].mxu0 }
 0x2ec   :  { %758 = vst.msk [vmem:[%s1503_s7 + $0xb0] sm:$0xff] %vm735_vm3, %v721_v0  ;;  %v724_v39 = vadd.f32 %v1364_v33, %v723_v38  ;;  %v1018_v6 = vpop.f32.mrb[75].mxu0 }
 0x2ee   :  { %759 = vst.msk [vmem:[%s1503_s7 + $0xb8] sm:$0xff] %vm735_vm3, %v724_v39 }
 0x2f1   :  { %v728_v24 = vpop.f32.mrb[76].mxu0 }
 0x2f2   :  { %v729_v40 = vadd.f32 %v1364_v33, %v728_v24  ;;  %v1021_v41 = vpop.f32.mrb[77].mxu0 }
 0x2f3   :  { %v731_v42 = vpop.f32.mrb[78].mxu0 }
 0x2f4   :  { %760 = vst.msk [vmem:[%s1503_s7 + $0xc0] sm:$0xff] %vm735_vm3, %v729_v40  ;;  %v732_v43 = vadd.f32 %v1364_v33, %v731_v42  ;;  %v1022_v44 = vpop.f32.mrb[79].mxu0 }
 0x2f6   :  { %761 = vst.msk [vmem:[%s1503_s7 + $0xc8] sm:$0xff] %vm735_vm3, %v732_v43 }

// kernel: tpu_custom_call.1
= control target key start
LH: loop header
LB: loop body
LE: loop exit
PB: predicated region body
PF: predicated region fallthrough
CT: control target
= control target key end

     0   :  { %v1032_v0 = vmov 0.0   ;;  %vm1033_vm0 = vmmov 0   ;;  %vm81_vm1 = vcmask 130048   ;;  %vm320_vm2 = vcmask 261120   ;;  %s1496_s1 = inlined_call_operand.vmem [shape: bf16[16,32], index: 1, kind: input, shape index: {}]   ;;  %s1497_s0 = inlined_call_operand.vmem [shape: f32[208,16], index: 0, kind: input, shape index: {}]   ;;  %s1498_s3 = inlined_call_operand.vmem [shape: bf16[32,32], index: 3, kind: input, shape index: {}]   ;;  %s1499_s5 = inlined_call_operand.vmem [shape: bf16[32,8], index: 5, kind: input, shape index: {}]   ;;  %s1500_s2 = inlined_call_operand.vmem [shape: f32[1,32], index: 2, kind: input, shape index: {}]   ;;  %s1501_s4 = inlined_call_operand.vmem [shape: f32[1,32], index: 4, kind: input, shape index: {}]   ;;  %s1502_s6 = inlined_call_operand.vmem [shape: f32[1,8], index: 6, kind: input, shape index: {}]   ;;  %s1503_s7 = inlined_call_operand.vmem [shape: f32[208,8], index: 7, kind: output, shape index: {}]  }
   0x1   :  { %857 = vmatprep.subr.bf16.mxu0 %v1032_v0  ;;  %v1027_v1 = vld [vmem:[%s1496_s1] sm:$0xff]   ;;  %859 = vmatprep.mubr.msk.bf16.mxu0 %vm1033_vm0, %v1032_v0  ;;  %v28_v3 = vld [vmem:[%s1497_s0 + $0x8] sm:$0xff]  ;;  %v41_v5 = vld [vmem:[%s1497_s0 + $0x70] sm:$0xff]  ;;  %vm735_vm3 = vcmask 64512  }
   0x2   :  { %v27_v2 = vld [vmem:[%s1497_s0] sm:$0xff]  ;;  %1023 = vmatprep.subr.bf16.mxu1 %v1032_v0  ;;  %887 = vmatprep.mubr.msk.bf16.mxu1 %vm1033_vm0, %v1032_v0  ;;  %v29_v6 = vld [vmem:[%s1497_s0 + $0x10] sm:$0xff]  ;;  %v30_v7 = vld [vmem:[%s1497_s0 + $0x18] sm:$0xff] }
   0x3   :  { %858 = vmatpush3.bf16.msra.mxu0 %v1027_v1  ;;  %v56_v4 = vpack.c.bf16 %v28_v3, %v27_v2  ;;  %1024 = vmatpush3.bf16.msra.mxu1 %v1027_v1  ;;  %v42_v8 = vld [vmem:[%s1497_s0 + $0x78] sm:$0xff]  ;;  %v57_v10 = vpack.c.bf16 %v30_v7, %v29_v6  ;;  %v43_v11 = vld [vmem:[%s1497_s0 + $0x80] sm:$0xff]  ;;  %v44_v12 = vld [vmem:[%s1497_s0 + $0x88] sm:$0xff] }
   0x4   :  { %911 = vmatprep.subr.bf16.mxu1 %v1032_v0  ;;  %967 = vmatprep.subr.bf16.mxu0 %v1032_v0  ;;  %v63_v9 = vpack.c.bf16 %v42_v8, %v41_v5  ;;  %v1028_v13 = vld [vmem:[%s1498_s3] sm:$0xff]   ;;  %v1029_v14 = vld [vmem:[%s1498_s3 + $0x8] sm:$0xff]   ;;  %v64_v15 = vpack.c.bf16 %v44_v12, %v43_v11  ;;  %v45_v19 = vld [vmem:[%s1497_s0 + $0x90] sm:$0xff] }
   0x5   :  { %v31_v16 = vld [vmem:[%s1497_s0 + $0x20] sm:$0xff]  ;;  %v32_v17 = vld [vmem:[%s1497_s0 + $0x28] sm:$0xff]  ;;  %v46_v20 = vld [vmem:[%s1497_s0 + $0x98] sm:$0xff] }
   0x6   :  { %860 = vmatmul.mubr.msk.bf16.vlgmr.msra.gmra.mrb[0].mxu0 %vm81_vm1, %v56_v4  ;;  %888 = vmatmul.mubr.msk.bf16.vlgmr.msra.gmra.mrb[0].mxu1 %vm81_vm1, %v63_v9  ;;  %v58_v18 = vpack.c.bf16 %v32_v17, %v31_v16  ;;  %v65_v21 = vpack.c.bf16 %v46_v20, %v45_v19  ;;  %v33_v22 = vld [vmem:[%s1497_s0 + $0x30] sm:$0xff]  ;;  %v34_v23 = vld [vmem:[%s1497_s0 + $0x38] sm:$0xff]  ;;  %v47_v25 = vld [vmem:[%s1497_s0 + $0xa0] sm:$0xff] }
   0x7   :  { %863 = vmatprep.mubr.msk.bf16.mxu0 %vm1033_vm0, %v1032_v0  ;;  %891 = vmatprep.mubr.msk.bf16.mxu1 %vm1033_vm0, %v1032_v0  ;;  %v59_v24 = vpack.c.bf16 %v34_v23, %v33_v22  ;;  %v48_v26 = vld [vmem:[%s1497_s0 + $0xa8] sm:$0xff]  ;;  %v35_v28 = vld [vmem:[%s1497_s0 + $0x40] sm:$0xff]  ;;  %v49_v31 = vld [vmem:[%s1497_s0 + $0xb0] sm:$0xff] }
   0x8   :  { %912 = vmatpush3.bf16.msra.mxu1 %v1028_v13  ;;  %v66_v27 = vpack.c.bf16 %v48_v26, %v47_v25  ;;  %v36_v29 = vld [vmem:[%s1497_s0 + $0x48] sm:$0xff]  ;;  %v50_v32 = vld [vmem:[%s1497_s0 + $0xb8] sm:$0xff]  ;;  %v37_v34 = vld [vmem:[%s1497_s0 + $0x50] sm:$0xff] }
   0x9   :  { %913 = vmatprep.subr.bf16.mxu1 %v1032_v0  ;;  %v60_v30 = vpack.c.bf16 %v36_v29, %v35_v28  ;;  %v67_v33 = vpack.c.bf16 %v50_v32, %v49_v31  ;;  %v38_v35 = vld [vmem:[%s1497_s0 + $0x58] sm:$0xff]  ;;  %v51_v37 = vld [vmem:[%s1497_s0 + $0xc0] sm:$0xff]  ;;  %v52_v38 = vld [vmem:[%s1497_s0 + $0xc8] sm:$0xff] }
   0xa   :  { %v61_v36 = vpack.c.bf16 %v38_v35, %v37_v34  ;;  %v68_v39 = vpack.c.bf16 %v52_v38, %v51_v37  ;;  %v39_v40 = vld [vmem:[%s1497_s0 + $0x60] sm:$0xff]  ;;  %v40_v41 = vld [vmem:[%s1497_s0 + $0x68] sm:$0xff] }
   0xb   :  { %v62_v42 = vpack.c.bf16 %v40_v41, %v39_v40  ;;  %v1030_v43 = vld [vmem:[%s1499_s5] sm:$0xff]   ;;  %v1031_v44 = vld [vmem:[%s1499_s5 + $0x8] sm:$0xff]  }
   0xc   :  { %914 = vmatpush3.bf16.msra.mxu1 %v1029_v14  ;;  %968 = vmatpush3.bf16.msra.mxu0 %v1030_v43  ;;  %v1219_v45 = vld [vmem:[%s1500_s2] ss:$0 sm:$0xff] }
   0xd   :  { %969 = vmatprep.subr.bf16.mxu0 %v1032_v0 }
   0xe   :  { %864 = vmatmul.mubr.msk.bf16.gmra.mrb[4].mxu0 %vm81_vm1, %v57_v10  ;;  %892 = vmatmul.mubr.msk.bf16.gmra.mrb[4].mxu1 %vm81_vm1, %v64_v15 }
   0xf   :  { %867 = vmatprep.mubr.msk.bf16.mxu0 %vm1033_vm0, %v1032_v0  ;;  %895 = vmatprep.mubr.msk.bf16.mxu1 %vm1033_vm0, %v1032_v0 }
  0x10   :  { %970 = vmatpush3.bf16.msra.mxu0 %v1031_v44 }
  0x16   :  { %868 = vmatmul.mubr.msk.bf16.gmra.mrb[8].mxu0 %vm81_vm1, %v58_v18  ;;  %896 = vmatmul.mubr.msk.bf16.gmra.mrb[8].mxu1 %vm81_vm1, %v65_v21 }
  0x17   :  { %871 = vmatprep.mubr.msk.bf16.mxu0 %vm1033_vm0, %v1032_v0  ;;  %899 = vmatprep.mubr.msk.bf16.mxu1 %vm1033_vm0, %v1032_v0 }
  0x1e   :  { %872 = vmatmul.mubr.msk.bf16.gmra.mrb[12].mxu0 %vm81_vm1, %v59_v24  ;;  %900 = vmatmul.mubr.msk.bf16.gmra.mrb[12].mxu1 %vm81_vm1, %v66_v27 }
  0x1f   :  { %875 = vmatprep.mubr.msk.bf16.mxu0 %vm1033_vm0, %v1032_v0  ;;  %903 = vmatprep.mubr.msk.bf16.mxu1 %vm1033_vm0, %v1032_v0 }
  0x26   :  { %876 = vmatmul.mubr.msk.bf16.gmra.mrb[16].mxu0 %vm81_vm1, %v60_v30  ;;  %904 = vmatmul.mubr.msk.bf16.gmra.mrb[16].mxu1 %vm81_vm1, %v67_v33 }
  0x27   :  { %879 = vmatprep.mubr.msk.bf16.mxu0 %vm1033_vm0, %v1032_v0  ;;  %907 = vmatprep.mubr.msk.bf16.mxu1 %vm1033_vm0, %v1032_v0 }
  0x2e   :  { %880 = vmatmul.mubr.msk.bf16.gmra.mrb[20].mxu0 %vm81_vm1, %v61_v36  ;;  %908 = vmatmul.mubr.msk.bf16.gmra.mrb[20].mxu1 %vm81_vm1, %v68_v39 }
  0x2f   :  { %883 = vmatprep.mubr.msk.bf16.mxu0 %vm1033_vm0, %v1032_v0  ;;  %915 = vmatprep.mubr.msk.bf16.mxu1 %vm1033_vm0, %v1032_v0 }
  0x36   :  { %884 = vmatmul.mubr.msk.bf16.gmra.mrb[24].mxu0 %vm81_vm1, %v62_v42 }
  0x37   :  { %971 = vmatprep.mubr.msk.bf16.mxu0 %vm1033_vm0, %v1032_v0 }
  0xd9   :  { %v155_v46 = vpop.f32.mrb[0].mxu0  ;;  %v211_v52 = vpop.f32.mrb[0].mxu1 }
  0xda   :  { %v156_v47 = vadd.f32 %v1219_v45, %v155_v46  ;;  %v861_v48 = vpop.f32.mrb[1].mxu0  ;;  %v212_v55 = vadd.f32 %v1219_v45, %v211_v52  ;;  %v889_v56 = vpop.f32.mrb[1].mxu1 }
  0xdb   :  { %v158_v49 = vpop.f32.mrb[2].mxu0  ;;  %v214_v57 = vpop.f32.mrb[2].mxu1 }
  0xdc   :  { %v159_v50 = vadd.f32 %v1219_v45, %v158_v49  ;;  %v862_v51 = vpop.f32.mrb[3].mxu0  ;;  %v258_v53 = vmax.f32 %v156_v47, 0.0  ;;  %v272_v59 = vmax.f32 %v212_v55, 0.0  ;;  %v215_v60 = vadd.f32 %v1219_v45, %v214_v57  ;;  %v890_v61 = vpop.f32.mrb[3].mxu1 }
  0xde   :  { %v259_v54 = vmax.f32 %v159_v50, 0.0  ;;  %v273_v2 = vmax.f32 %v215_v60, 0.0 }
  0xe0   :  { %v289_v58 = vpack.c.bf16 %v259_v54, %v258_v53  ;;  %v1230_v6 = vpack.c.bf16 %v273_v2, %v272_v59 }
  0xe1   :  { %v163_v62 = vpop.f32.mrb[4].mxu0  ;;  %v219_v7 = vpop.f32.mrb[4].mxu1 }
  0xe2   :  { %v164_v63 = vadd.f32 %v1219_v45, %v163_v62  ;;  %v865_v1 = vpop.f32.mrb[5].mxu0  ;;  %916 = vmatmul.mubr.msk.bf16.vlgmr.msra.gmra.mrb[24].mxu1 %vm320_vm2, %v289_v58  ;;  %v220_v10 = vadd.f32 %v1219_v45, %v219_v7  ;;  %v893_v11 = vpop.f32.mrb[5].mxu1 }
  0xe3   :  { %v166_v3 = vpop.f32.mrb[6].mxu0  ;;  %919 = vmatprep.mubr.msk.bf16.mxu1 %vm1033_vm0, %v1032_v0  ;;  %v222_v12 = vpop.f32.mrb[6].mxu1 }
  0xe4   :  { %v167_v4 = vadd.f32 %v1219_v45, %v166_v3  ;;  %v866_v5 = vpop.f32.mrb[7].mxu0  ;;  %v260_v8 = vmax.f32 %v164_v63, 0.0  ;;  %v274_v14 = vmax.f32 %v220_v10, 0.0  ;;  %v223_v15 = vadd.f32 %v1219_v45, %v222_v12  ;;  %v894_v16 = vpop.f32.mrb[7].mxu1 }
  0xe6   :  { %v261_v9 = vmax.f32 %v167_v4, 0.0  ;;  %v275_v20 = vmax.f32 %v223_v15, 0.0 }
  0xe8   :  { %v290_v13 = vpack.c.bf16 %v261_v9, %v260_v8  ;;  %v1239_v24 = vpack.c.bf16 %v275_v20, %v274_v14 }
  0xe9   :  { %v171_v17 = vpop.f32.mrb[8].mxu0  ;;  %v227_v25 = vpop.f32.mrb[8].mxu1 }
  0xea   :  { %v172_v18 = vadd.f32 %v1219_v45, %v171_v17  ;;  %v869_v19 = vpop.f32.mrb[9].mxu0  ;;  %920 = vmatmul.mubr.msk.bf16.gmra.mrb[28].mxu1 %vm320_vm2, %v290_v13  ;;  %v228_v28 = vadd.f32 %v1219_v45, %v227_v25  ;;  %v897_v29 = vpop.f32.mrb[9].mxu1 }
  0xeb   :  { %v174_v21 = vpop.f32.mrb[10].mxu0  ;;  %923 = vmatprep.mubr.msk.bf16.mxu1 %vm1033_vm0, %v1032_v0  ;;  %v230_v30 = vpop.f32.mrb[10].mxu1 }
  0xec   :  { %v175_v22 = vadd.f32 %v1219_v45, %v174_v21  ;;  %v870_v23 = vpop.f32.mrb[11].mxu0  ;;  %v262_v26 = vmax.f32 %v172_v18, 0.0  ;;  %v276_v32 = vmax.f32 %v228_v28, 0.0  ;;  %v231_v33 = vadd.f32 %v1219_v45, %v230_v30  ;;  %v898_v34 = vpop.f32.mrb[11].mxu1 }
  0xee   :  { %v263_v27 = vmax.f32 %v175_v22, 0.0  ;;  %v277_v38 = vmax.f32 %v231_v33, 0.0 }
  0xf0   :  { %v291_v31 = vpack.c.bf16 %v263_v27, %v262_v26  ;;  %v1248_v42 = vpack.c.bf16 %v277_v38, %v276_v32 }
  0xf1   :  { %v179_v35 = vpop.f32.mrb[12].mxu0  ;;  %v235_v43 = vpop.f32.mrb[12].mxu1 }
  0xf2   :  { %v180_v36 = vadd.f32 %v1219_v45, %v179_v35  ;;  %v873_v37 = vpop.f32.mrb[13].mxu0  ;;  %924 = vmatmul.mubr.msk.bf16.gmra.mrb[32].mxu1 %vm320_vm2, %v291_v31  ;;  %v236_v47 = vadd.f32 %v1219_v45, %v235_v43  ;;  %v901_v48 = vpop.f32.mrb[13].mxu1 }
  0xf3   :  { %v182_v39 = vpop.f32.mrb[14].mxu0  ;;  %927 = vmatprep.mubr.msk.bf16.mxu1 %vm1033_vm0, %v1032_v0  ;;  %v238_v49 = vpop.f32.mrb[14].mxu1 }
  0xf4   :  { %v183_v40 = vadd.f32 %v1219_v45, %v182_v39  ;;  %v874_v41 = vpop.f32.mrb[15].mxu0  ;;  %v264_v44 = vmax.f32 %v180_v36, 0.0  ;;  %v278_v51 = vmax.f32 %v236_v47, 0.0  ;;  %v239_v52 = vadd.f32 %v1219_v45, %v238_v49  ;;  %v902_v53 = vpop.f32.mrb[15].mxu1 }
  0xf6   :  { %v265_v46 = vmax.f32 %v183_v40, 0.0  ;;  %v279_v57 = vmax.f32 %v239_v52, 0.0 }
  0xf8   :  { %v292_v50 = vpack.c.bf16 %v265_v46, %v264_v44  ;;  %v299_v61 = vpack.c.bf16 %v279_v57, %v278_v51 }
  0xf9   :  { %v187_v54 = vpop.f32.mrb[16].mxu0  ;;  %v243_v62 = vpop.f32.mrb[16].mxu1 }
  0xfa   :  { %v188_v55 = vadd.f32 %v1219_v45, %v187_v54  ;;  %v877_v56 = vpop.f32.mrb[17].mxu0  ;;  %928 = vmatmul.mubr.msk.bf16.gmra.mrb[36].mxu1 %vm320_vm2, %v292_v50  ;;  %v244_v2 = vadd.f32 %v1219_v45, %v243_v62  ;;  %v905_v3 = vpop.f32.mrb[17].mxu1 }
  0xfb   :  { %v190_v58 = vpop.f32.mrb[18].mxu0  ;;  %931 = vmatprep.mubr.msk.bf16.mxu1 %vm1033_vm0, %v1032_v0  ;;  %v246_v4 = vpop.f32.mrb[18].mxu1 }
  0xfc   :  { %v191_v59 = vadd.f32 %v1219_v45, %v190_v58  ;;  %v878_v60 = vpop.f32.mrb[19].mxu0  ;;  %v266_v63 = vmax.f32 %v188_v55, 0.0  ;;  %v280_v7 = vmax.f32 %v244_v2, 0.0  ;;  %v247_v8 = vadd.f32 %v1219_v45, %v246_v4  ;;  %v906_v9 = vpop.f32.mrb[19].mxu1 }
  0xfe   :  { %v267_v1 = vmax.f32 %v191_v59, 0.0  ;;  %v281_v13 = vmax.f32 %v247_v8, 0.0 }
 0x100   :  { %v293_v5 = vpack.c.bf16 %v267_v1, %v266_v63  ;;  %v300_v17 = vpack.c.bf16 %v281_v13, %v280_v7 }
 0x101   :  { %v195_v10 = vpop.f32.mrb[20].mxu0  ;;  %v251_v18 = vpop.f32.mrb[20].mxu1 }
 0x102   :  { %v196_v11 = vadd.f32 %v1219_v45, %v195_v10  ;;  %v881_v12 = vpop.f32.mrb[21].mxu0  ;;  %932 = vmatmul.mubr.msk.bf16.gmra.mrb[40].mxu1 %vm320_vm2, %v293_v5  ;;  %v252_v21 = vadd.f32 %v1219_v45, %v251_v18  ;;  %v909_v22 = vpop.f32.mrb[21].mxu1 }
 0x103   :  { %v198_v14 = vpop.f32.mrb[22].mxu0  ;;  %935 = vmatprep.mubr.msk.bf16.mxu1 %vm1033_vm0, %v1032_v0  ;;  %v254_v23 = vpop.f32.mrb[22].mxu1 }
 0x104   :  { %v199_v15 = vadd.f32 %v1219_v45, %v198_v14  ;;  %v882_v16 = vpop.f32.mrb[23].mxu0  ;;  %v268_v19 = vmax.f32 %v196_v11, 0.0  ;;  %v282_v26 = vmax.f32 %v252_v21, 0.0  ;;  %v255_v27 = vadd.f32 %v1219_v45, %v254_v23  ;;  %v910_v28 = vpop.f32.mrb[23].mxu1 }
 0x106   :  { %v269_v20 = vmax.f32 %v199_v15, 0.0  ;;  %v283_v32 = vmax.f32 %v255_v27, 0.0 }
 0x108   :  { %v294_v25 = vpack.c.bf16 %v269_v20, %v268_v19  ;;  %v301_v36 = vpack.c.bf16 %v283_v32, %v282_v26 }
 0x109   :  { %v203_v29 = vpop.f32.mrb[24].mxu0 }
 0x10a   :  { %v204_v30 = vadd.f32 %v1219_v45, %v203_v29  ;;  %v885_v31 = vpop.f32.mrb[25].mxu0  ;;  %936 = vmatmul.mubr.msk.bf16.gmra.mrb[44].mxu1 %vm320_vm2, %v294_v25 }
 0x10b   :  { %v206_v33 = vpop.f32.mrb[26].mxu0  ;;  %939 = vmatprep.mubr.msk.bf16.mxu1 %vm1033_vm0, %v1032_v0 }
 0x10c   :  { %v207_v34 = vadd.f32 %v1219_v45, %v206_v33  ;;  %v886_v35 = vpop.f32.mrb[27].mxu0  ;;  %v270_v37 = vmax.f32 %v204_v30, 0.0  ;;  %v1296_v45 = vld [vmem:[%s1501_s4] ss:$0 sm:$0xff] }
 0x10e   :  { %v271_v38 = vmax.f32 %v207_v34, 0.0 }
 0x110   :  { %v295_v39 = vpack.c.bf16 %v271_v38, %v270_v37 }
 0x112   :  { %940 = vmatmul.mubr.msk.bf16.gmra.mrb[48].mxu1 %vm320_vm2, %v295_v39 }
 0x113   :  { %943 = vmatprep.mubr.msk.bf16.mxu1 %vm1033_vm0, %v1032_v0 }
 0x11a   :  { %944 = vmatmul.mubr.msk.bf16.gmra.mrb[52].mxu1 %vm320_vm2, %v1230_v6 }
 0x11b   :  { %947 = vmatprep.mubr.msk.bf16.mxu1 %vm1033_vm0, %v1032_v0 }
 0x122   :  { %948 = vmatmul.mubr.msk.bf16.gmra.mrb[56].mxu1 %vm320_vm2, %v1239_v24 }
 0x123   :  { %951 = vmatprep.mubr.msk.bf16.mxu1 %vm1033_vm0, %v1032_v0 }
 0x12a   :  { %952 = vmatmul.mubr.msk.bf16.gmra.mrb[60].mxu1 %vm320_vm2, %v1248_v42 }
 0x12b   :  { %955 = vmatprep.mubr.msk.bf16.mxu1 %vm1033_vm0, %v1032_v0 }
 0x132   :  { %956 = vmatmul.mubr.msk.bf16.gmra.mrb[64].mxu1 %vm320_vm2, %v299_v61 }
 0x133   :  { %959 = vmatprep.mubr.msk.bf16.mxu1 %vm1033_vm0, %v1032_v0 }
 0x13a   :  { %960 = vmatmul.mubr.msk.bf16.gmra.mrb[68].mxu1 %vm320_vm2, %v300_v17 }
 0x13b   :  { %963 = vmatprep.mubr.msk.bf16.mxu1 %vm1033_vm0, %v1032_v0 }
 0x142   :  { %964 = vmatmul.mubr.msk.bf16.gmra.mrb[72].mxu1 %vm320_vm2, %v301_v36 }
 0x1b5   :  { %v394_v6 = vpop.f32.mrb[24].mxu1 }
 0x1b6   :  { %v395_v24 = vadd.f32 %v1296_v45, %v394_v6  ;;  %v917_v40 = vpop.f32.mrb[25].mxu1 }
 0x1b7   :  { %v397_v41 = vpop.f32.mrb[26].mxu1 }
 0x1b8   :  { %v398_v42 = vadd.f32 %v1296_v45, %v397_v41  ;;  %v918_v43 = vpop.f32.mrb[27].mxu1  ;;  %v497_v44 = vmax.f32 %v395_v24, 0.0 }
 0x1ba   :  { %v498_v46 = vmax.f32 %v398_v42, 0.0 }
 0x1bc   :  { %v528_v47 = vpack.c.bf16 %v498_v46, %v497_v44 }
 0x1bd   :  { %v402_v48 = vpop.f32.mrb[28].mxu1 }
 0x1be   :  { %v403_v49 = vadd.f32 %v1296_v45, %v402_v48  ;;  %v921_v50 = vpop.f32.mrb[29].mxu1  ;;  %972 = vmatmul.mubr.msk.bf16.vlgmr.msra.gmra.mrb[28].mxu0 %vm320_vm2, %v528_v47 }
 0x1bf   :  { %v405_v51 = vpop.f32.mrb[30].mxu1  ;;  %975 = vmatprep.mubr.msk.bf16.mxu0 %vm1033_vm0, %v1032_v0 }
 0x1c0   :  { %v406_v52 = vadd.f32 %v1296_v45, %v405_v51  ;;  %v922_v53 = vpop.f32.mrb[31].mxu1  ;;  %v499_v54 = vmax.f32 %v403_v49, 0.0 }
 0x1c2   :  { %v500_v55 = vmax.f32 %v406_v52, 0.0 }
 0x1c4   :  { %v529_v56 = vpack.c.bf16 %v500_v55, %v499_v54 }
 0x1c5   :  { %v410_v57 = vpop.f32.mrb[32].mxu1 }
 0x1c6   :  { %v411_v58 = vadd.f32 %v1296_v45, %v410_v57  ;;  %v925_v59 = vpop.f32.mrb[33].mxu1  ;;  %976 = vmatmul.mubr.msk.bf16.gmra.mrb[32].mxu0 %vm320_vm2, %v529_v56 }
 0x1c7   :  { %v413_v60 = vpop.f32.mrb[34].mxu1  ;;  %979 = vmatprep.mubr.msk.bf16.mxu0 %vm1033_vm0, %v1032_v0 }
 0x1c8   :  { %v414_v61 = vadd.f32 %v1296_v45, %v413_v60  ;;  %v926_v62 = vpop.f32.mrb[35].mxu1  ;;  %v501_v63 = vmax.f32 %v411_v58, 0.0 }
 0x1ca   :  { %v502_v1 = vmax.f32 %v414_v61, 0.0 }
 0x1cc   :  { %v530_v2 = vpack.c.bf16 %v502_v1, %v501_v63 }
 0x1cd   :  { %v418_v3 = vpop.f32.mrb[36].mxu1 }
 0x1ce   :  { %v419_v4 = vadd.f32 %v1296_v45, %v418_v3  ;;  %v929_v5 = vpop.f32.mrb[37].mxu1  ;;  %980 = vmatmul.mubr.msk.bf16.gmra.mrb[36].mxu0 %vm320_vm2, %v530_v2 }
 0x1cf   :  { %v421_v7 = vpop.f32.mrb[38].mxu1  ;;  %983 = vmatprep.mubr.msk.bf16.mxu0 %vm1033_vm0, %v1032_v0 }
 0x1d0   :  { %v422_v8 = vadd.f32 %v1296_v45, %v421_v7  ;;  %v930_v9 = vpop.f32.mrb[39].mxu1  ;;  %v503_v10 = vmax.f32 %v419_v4, 0.0 }
 0x1d2   :  { %v504_v11 = vmax.f32 %v422_v8, 0.0 }
 0x1d4   :  { %v531_v12 = vpack.c.bf16 %v504_v11, %v503_v10 }
 0x1d5   :  { %v426_v13 = vpop.f32.mrb[40].mxu1 }
 0x1d6   :  { %v427_v14 = vadd.f32 %v1296_v45, %v426_v13  ;;  %v933_v15 = vpop.f32.mrb[41].mxu1  ;;  %984 = vmatmul.mubr.msk.bf16.gmra.mrb[40].mxu0 %vm320_vm2, %v531_v12 }
 0x1d7   :  { %v429_v16 = vpop.f32.mrb[42].mxu1  ;;  %987 = vmatprep.mubr.msk.bf16.mxu0 %vm1033_vm0, %v1032_v0 }
 0x1d8   :  { %v430_v17 = vadd.f32 %v1296_v45, %v429_v16  ;;  %v934_v18 = vpop.f32.mrb[43].mxu1  ;;  %v505_v19 = vmax.f32 %v427_v14, 0.0 }
 0x1da   :  { %v506_v20 = vmax.f32 %v430_v17, 0.0 }
 0x1dc   :  { %v532_v21 = vpack.c.bf16 %v506_v20, %v505_v19 }
 0x1dd   :  { %v434_v22 = vpop.f32.mrb[44].mxu1 }
 0x1de   :  { %v435_v23 = vadd.f32 %v1296_v45, %v434_v22  ;;  %v937_v25 = vpop.f32.mrb[45].mxu1  ;;  %988 = vmatmul.mubr.msk.bf16.gmra.mrb[44].mxu0 %vm320_vm2, %v532_v21 }
 0x1df   :  { %v437_v26 = vpop.f32.mrb[46].mxu1  ;;  %991 = vmatprep.mubr.msk.bf16.mxu0 %vm1033_vm0, %v1032_v0 }
 0x1e0   :  { %v438_v27 = vadd.f32 %v1296_v45, %v437_v26  ;;  %v938_v28 = vpop.f32.mrb[47].mxu1  ;;  %v507_v29 = vmax.f32 %v435_v23, 0.0 }
 0x1e2   :  { %v508_v30 = vmax.f32 %v438_v27, 0.0 }
 0x1e4   :  { %v533_v31 = vpack.c.bf16 %v508_v30, %v507_v29 }
 0x1e5   :  { %v442_v32 = vpop.f32.mrb[48].mxu1 }
 0x1e6   :  { %v443_v33 = vadd.f32 %v1296_v45, %v442_v32  ;;  %v941_v34 = vpop.f32.mrb[49].mxu1  ;;  %992 = vmatmul.mubr.msk.bf16.gmra.mrb[48].mxu0 %vm320_vm2, %v533_v31 }
 0x1e7   :  { %v445_v35 = vpop.f32.mrb[50].mxu1  ;;  %995 = vmatprep.mubr.msk.bf16.mxu0 %vm1033_vm0, %v1032_v0 }
 0x1e8   :  { %v446_v36 = vadd.f32 %v1296_v45, %v445_v35  ;;  %v942_v37 = vpop.f32.mrb[51].mxu1  ;;  %v509_v38 = vmax.f32 %v443_v33, 0.0  ;;  %v1364_v33 = vld [vmem:[%s1502_s6] ss:$0 sm:$0xff] }
 0x1ea   :  { %v510_v39 = vmax.f32 %v446_v36, 0.0 }
 0x1ec   :  { %v534_v6 = vpack.c.bf16 %v510_v39, %v509_v38 }
 0x1ed   :  { %v450_v24 = vpop.f32.mrb[52].mxu1 }
 0x1ee   :  { %v451_v40 = vadd.f32 %v1296_v45, %v450_v24  ;;  %v945_v41 = vpop.f32.mrb[53].mxu1  ;;  %996 = vmatmul.mubr.msk.bf16.gmra.mrb[52].mxu0 %vm320_vm2, %v534_v6 }
 0x1ef   :  { %v453_v42 = vpop.f32.mrb[54].mxu1  ;;  %999 = vmatprep.mubr.msk.bf16.mxu0 %vm1033_vm0, %v1032_v0 }
 0x1f0   :  { %v454_v43 = vadd.f32 %v1296_v45, %v453_v42  ;;  %v946_v44 = vpop.f32.mrb[55].mxu1  ;;  %v511_v46 = vmax.f32 %v451_v40, 0.0 }
 0x1f2   :  { %v512_v47 = vmax.f32 %v454_v43, 0.0 }
 0x1f4   :  { %v535_v48 = vpack.c.bf16 %v512_v47, %v511_v46 }
 0x1f5   :  { %v458_v49 = vpop.f32.mrb[56].mxu1 }
 0x1f6   :  { %v459_v50 = vadd.f32 %v1296_v45, %v458_v49  ;;  %v949_v51 = vpop.f32.mrb[57].mxu1  ;;  %1000 = vmatmul.mubr.msk.bf16.gmra.mrb[56].mxu0 %vm320_vm2, %v535_v48 }
 0x1f7   :  { %v461_v52 = vpop.f32.mrb[58].mxu1  ;;  %1003 = vmatprep.mubr.msk.bf16.mxu0 %vm1033_vm0, %v1032_v0 }
 0x1f8   :  { %v462_v53 = vadd.f32 %v1296_v45, %v461_v52  ;;  %v950_v54 = vpop.f32.mrb[59].mxu1  ;;  %v513_v55 = vmax.f32 %v459_v50, 0.0 }
 0x1fa   :  { %v514_v56 = vmax.f32 %v462_v53, 0.0 }
 0x1fc   :  { %v536_v57 = vpack.c.bf16 %v514_v56, %v513_v55 }
 0x1fd   :  { %v466_v58 = vpop.f32.mrb[60].mxu1 }
 0x1fe   :  { %v467_v59 = vadd.f32 %v1296_v45, %v466_v58  ;;  %v953_v60 = vpop.f32.mrb[61].mxu1  ;;  %1004 = vmatmul.mubr.msk.bf16.gmra.mrb[60].mxu0 %vm320_vm2, %v536_v57 }
 0x1ff   :  { %v469_v61 = vpop.f32.mrb[62].mxu1  ;;  %1007 = vmatprep.mubr.msk.bf16.mxu0 %vm1033_vm0, %v1032_v0 }
 0x200   :  { %v470_v62 = vadd.f32 %v1296_v45, %v469_v61  ;;  %v954_v63 = vpop.f32.mrb[63].mxu1  ;;  %v515_v1 = vmax.f32 %v467_v59, 0.0 }
 0x202   :  { %v516_v2 = vmax.f32 %v470_v62, 0.0 }
 0x204   :  { %v537_v3 = vpack.c.bf16 %v516_v2, %v515_v1 }
 0x205   :  { %v474_v4 = vpop.f32.mrb[64].mxu1 }
 0x206   :  { %v475_v5 = vadd.f32 %v1296_v45, %v474_v4  ;;  %v957_v7 = vpop.f32.mrb[65].mxu1  ;;  %1008 = vmatmul.mubr.msk.bf16.gmra.mrb[64].mxu0 %vm320_vm2, %v537_v3 }
 0x207   :  { %v477_v8 = vpop.f32.mrb[66].mxu1  ;;  %1011 = vmatprep.mubr.msk.bf16.mxu0 %vm1033_vm0, %v1032_v0 }
 0x208   :  { %v478_v9 = vadd.f32 %v1296_v45, %v477_v8  ;;  %v958_v10 = vpop.f32.mrb[67].mxu1  ;;  %v517_v11 = vmax.f32 %v475_v5, 0.0 }
 0x20a   :  { %v518_v12 = vmax.f32 %v478_v9, 0.0 }
 0x20c   :  { %v538_v13 = vpack.c.bf16 %v518_v12, %v517_v11 }
 0x20d   :  { %v482_v14 = vpop.f32.mrb[68].mxu1 }
 0x20e   :  { %v483_v15 = vadd.f32 %v1296_v45, %v482_v14  ;;  %v961_v16 = vpop.f32.mrb[69].mxu1  ;;  %1012 = vmatmul.mubr.msk.bf16.gmra.mrb[68].mxu0 %vm320_vm2, %v538_v13 }
 0x20f   :  { %v485_v17 = vpop.f32.mrb[70].mxu1  ;;  %1015 = vmatprep.mubr.msk.bf16.mxu0 %vm1033_vm0, %v1032_v0 }
 0x210   :  { %v486_v18 = vadd.f32 %v1296_v45, %v485_v17  ;;  %v962_v19 = vpop.f32.mrb[71].mxu1  ;;  %v519_v20 = vmax.f32 %v483_v15, 0.0 }
 0x212   :  { %v520_v21 = vmax.f32 %v486_v18, 0.0 }
 0x214   :  { %v539_v22 = vpack.c.bf16 %v520_v21, %v519_v20 }
 0x215   :  { %v490_v23 = vpop.f32.mrb[72].mxu1 }
 0x216   :  { %v491_v25 = vadd.f32 %v1296_v45, %v490_v23  ;;  %v965_v26 = vpop.f32.mrb[73].mxu1  ;;  %1016 = vmatmul.mubr.msk.bf16.gmra.mrb[72].mxu0 %vm320_vm2, %v539_v22 }
 0x217   :  { %v493_v27 = vpop.f32.mrb[74].mxu1  ;;  %1019 = vmatprep.mubr.msk.bf16.mxu0 %vm1033_vm0, %v1032_v0 }
 0x218   :  { %v494_v28 = vadd.f32 %v1296_v45, %v493_v27  ;;  %v966_v29 = vpop.f32.mrb[75].mxu1  ;;  %v521_v30 = vmax.f32 %v491_v25, 0.0 }
 0x21a   :  { %v522_v31 = vmax.f32 %v494_v28, 0.0 }
 0x21c   :  { %v540_v32 = vpack.c.bf16 %v522_v31, %v521_v30 }
 0x21e   :  { %1020 = vmatmul.mubr.msk.bf16.gmra.mrb[76].mxu0 %vm320_vm2, %v540_v32 }
 0x291   :  { %v632_v34 = vpop.f32.mrb[28].mxu0 }
 0x292   :  { %v633_v35 = vadd.f32 %v1364_v33, %v632_v34  ;;  %v973_v36 = vpop.f32.mrb[29].mxu0 }
 0x293   :  { %v635_v37 = vpop.f32.mrb[30].mxu0 }
 0x294   :  { %736 = vst.msk [vmem:[%s1503_s7] sm:$0xff] %vm735_vm3, %v633_v35  ;;  %v636_v0 = vadd.f32 %v1364_v33, %v635_v37  ;;  %v974_v45 = vpop.f32.mrb[31].mxu0 }
 0x296   :  { %737 = vst.msk [vmem:[%s1503_s7 + $0x8] sm:$0xff] %vm735_vm3, %v636_v0 }
 0x299   :  { %v640_v38 = vpop.f32.mrb[32].mxu0 }
 0x29a   :  { %v641_v39 = vadd.f32 %v1364_v33, %v640_v38  ;;  %v977_v6 = vpop.f32.mrb[33].mxu0 }
 0x29b   :  { %v643_v24 = vpop.f32.mrb[34].mxu0 }
 0x29c   :  { %738 = vst.msk [vmem:[%s1503_s7 + $0x10] sm:$0xff] %vm735_vm3, %v641_v39  ;;  %v644_v40 = vadd.f32 %v1364_v33, %v643_v24  ;;  %v978_v41 = vpop.f32.mrb[35].mxu0 }
 0x29e   :  { %739 = vst.msk [vmem:[%s1503_s7 + $0x18] sm:$0xff] %vm735_vm3, %v644_v40 }
 0x2a1   :  { %v648_v42 = vpop.f32.mrb[36].mxu0 }
 0x2a2   :  { %v649_v43 = vadd.f32 %v1364_v33, %v648_v42  ;;  %v981_v44 = vpop.f32.mrb[37].mxu0 }
 0x2a3   :  { %v651_v46 = vpop.f32.mrb[38].mxu0 }
 0x2a4   :  { %740 = vst.msk [vmem:[%s1503_s7 + $0x20] sm:$0xff] %vm735_vm3, %v649_v43  ;;  %v652_v47 = vadd.f32 %v1364_v33, %v651_v46  ;;  %v982_v48 = vpop.f32.mrb[39].mxu0 }
 0x2a6   :  { %741 = vst.msk [vmem:[%s1503_s7 + $0x28] sm:$0xff] %vm735_vm3, %v652_v47 }
 0x2a9   :  { %v656_v49 = vpop.f32.mrb[40].mxu0 }
 0x2aa   :  { %v657_v50 = vadd.f32 %v1364_v33, %v656_v49  ;;  %v985_v51 = vpop.f32.mrb[41].mxu0 }
 0x2ab   :  { %v659_v52 = vpop.f32.mrb[42].mxu0 }
 0x2ac   :  { %742 = vst.msk [vmem:[%s1503_s7 + $0x30] sm:$0xff] %vm735_vm3, %v657_v50  ;;  %v660_v53 = vadd.f32 %v1364_v33, %v659_v52  ;;  %v986_v54 = vpop.f32.mrb[43].mxu0 }
 0x2ae   :  { %743 = vst.msk [vmem:[%s1503_s7 + $0x38] sm:$0xff] %vm735_vm3, %v660_v53 }
 0x2b1   :  { %v664_v55 = vpop.f32.mrb[44].mxu0 }
 0x2b2   :  { %v665_v56 = vadd.f32 %v1364_v33, %v664_v55  ;;  %v989_v57 = vpop.f32.mrb[45].mxu0 }
 0x2b3   :  { %v667_v58 = vpop.f32.mrb[46].mxu0 }
 0x2b4   :  { %744 = vst.msk [vmem:[%s1503_s7 + $0x40] sm:$0xff] %vm735_vm3, %v665_v56  ;;  %v668_v59 = vadd.f32 %v1364_v33, %v667_v58  ;;  %v990_v60 = vpop.f32.mrb[47].mxu0 }
 0x2b6   :  { %745 = vst.msk [vmem:[%s1503_s7 + $0x48] sm:$0xff] %vm735_vm3, %v668_v59 }
 0x2b9   :  { %v672_v61 = vpop.f32.mrb[48].mxu0 }
 0x2ba   :  { %v673_v62 = vadd.f32 %v1364_v33, %v672_v61  ;;  %v993_v63 = vpop.f32.mrb[49].mxu0 }
 0x2bb   :  { %v675_v1 = vpop.f32.mrb[50].mxu0 }
 0x2bc   :  { %746 = vst.msk [vmem:[%s1503_s7 + $0x50] sm:$0xff] %vm735_vm3, %v673_v62  ;;  %v676_v2 = vadd.f32 %v1364_v33, %v675_v1  ;;  %v994_v3 = vpop.f32.mrb[51].mxu0 }
 0x2be   :  { %747 = vst.msk [vmem:[%s1503_s7 + $0x58] sm:$0xff] %vm735_vm3, %v676_v2 }
 0x2c1   :  { %v680_v4 = vpop.f32.mrb[52].mxu0 }
 0x2c2   :  { %v681_v5 = vadd.f32 %v1364_v33, %v680_v4  ;;  %v997_v7 = vpop.f32.mrb[53].mxu0 }
 0x2c3   :  { %v683_v8 = vpop.f32.mrb[54].mxu0 }
 0x2c4   :  { %748 = vst.msk [vmem:[%s1503_s7 + $0x60] sm:$0xff] %vm735_vm3, %v681_v5  ;;  %v684_v9 = vadd.f32 %v1364_v33, %v683_v8  ;;  %v998_v10 = vpop.f32.mrb[55].mxu0 }
 0x2c6   :  { %749 = vst.msk [vmem:[%s1503_s7 + $0x68] sm:$0xff] %vm735_vm3, %v684_v9 }
 0x2c9   :  { %v688_v11 = vpop.f32.mrb[56].mxu0 }
 0x2ca   :  { %v689_v12 = vadd.f32 %v1364_v33, %v688_v11  ;;  %v1001_v13 = vpop.f32.mrb[57].mxu0 }
 0x2cb   :  { %v691_v14 = vpop.f32.mrb[58].mxu0 }
 0x2cc   :  { %750 = vst.msk [vmem:[%s1503_s7 + $0x70] sm:$0xff] %vm735_vm3, %v689_v12  ;;  %v692_v15 = vadd.f32 %v1364_v33, %v691_v14  ;;  %v1002_v16 = vpop.f32.mrb[59].mxu0 }
 0x2ce   :  { %751 = vst.msk [vmem:[%s1503_s7 + $0x78] sm:$0xff] %vm735_vm3, %v692_v15 }
 0x2d1   :  { %v696_v17 = vpop.f32.mrb[60].mxu0 }
 0x2d2   :  { %v697_v18 = vadd.f32 %v1364_v33, %v696_v17  ;;  %v1005_v19 = vpop.f32.mrb[61].mxu0 }
 0x2d3   :  { %v699_v20 = vpop.f32.mrb[62].mxu0 }
 0x2d4   :  { %752 = vst.msk [vmem:[%s1503_s7 + $0x80] sm:$0xff] %vm735_vm3, %v697_v18  ;;  %v700_v21 = vadd.f32 %v1364_v33, %v699_v20  ;;  %v1006_v22 = vpop.f32.mrb[63].mxu0 }
 0x2d6   :  { %753 = vst.msk [vmem:[%s1503_s7 + $0x88] sm:$0xff] %vm735_vm3, %v700_v21 }
 0x2d9   :  { %v704_v23 = vpop.f32.mrb[64].mxu0 }
 0x2da   :  { %v705_v25 = vadd.f32 %v1364_v33, %v704_v23  ;;  %v1009_v26 = vpop.f32.mrb[65].mxu0 }
 0x2db   :  { %v707_v27 = vpop.f32.mrb[66].mxu0 }
 0x2dc   :  { %754 = vst.msk [vmem:[%s1503_s7 + $0x90] sm:$0xff] %vm735_vm3, %v705_v25  ;;  %v708_v28 = vadd.f32 %v1364_v33, %v707_v27  ;;  %v1010_v29 = vpop.f32.mrb[67].mxu0 }
 0x2de   :  { %755 = vst.msk [vmem:[%s1503_s7 + $0x98] sm:$0xff] %vm735_vm3, %v708_v28 }
 0x2e1   :  { %v712_v30 = vpop.f32.mrb[68].mxu0 }
 0x2e2   :  { %v713_v31 = vadd.f32 %v1364_v33, %v712_v30  ;;  %v1013_v32 = vpop.f32.mrb[69].mxu0 }
 0x2e3   :  { %v715_v34 = vpop.f32.mrb[70].mxu0 }
 0x2e4   :  { %756 = vst.msk [vmem:[%s1503_s7 + $0xa0] sm:$0xff] %vm735_vm3, %v713_v31  ;;  %v716_v35 = vadd.f32 %v1364_v33, %v715_v34  ;;  %v1014_v36 = vpop.f32.mrb[71].mxu0 }
 0x2e6   :  { %757 = vst.msk [vmem:[%s1503_s7 + $0xa8] sm:$0xff] %vm735_vm3, %v716_v35 }
 0x2e9   :  { %v720_v37 = vpop.f32.mrb[72].mxu0 }
 0x2ea   :  { %v721_v0 = vadd.f32 %v1364_v33, %v720_v37  ;;  %v1017_v45 = vpop.f32.mrb[73].mxu0 }
 0x2eb   :  { %v723_v38 = vpop.f32.mrb[74].mxu0 }
 0x2ec   :  { %758 = vst.msk [vmem:[%s1503_s7 + $0xb0] sm:$0xff] %vm735_vm3, %v721_v0  ;;  %v724_v39 = vadd.f32 %v1364_v33, %v723_v38  ;;  %v1018_v6 = vpop.f32.mrb[75].mxu0 }
 0x2ee   :  { %759 = vst.msk [vmem:[%s1503_s7 + $0xb8] sm:$0xff] %vm735_vm3, %v724_v39 }
 0x2f1   :  { %v728_v24 = vpop.f32.mrb[76].mxu0 }
 0x2f2   :  { %v729_v40 = vadd.f32 %v1364_v33, %v728_v24  ;;  %v1021_v41 = vpop.f32.mrb[77].mxu0 }
 0x2f3   :  { %v731_v42 = vpop.f32.mrb[78].mxu0 }
 0x2f4   :  { %760 = vst.msk [vmem:[%s1503_s7 + $0xc0] sm:$0xff] %vm735_vm3, %v729_v40  ;;  %v732_v43 = vadd.f32 %v1364_v33, %v731_v42  ;;  %v1022_v44 = vpop.f32.mrb[79].mxu0 }
 0x2f6   :  { %761 = vst.msk [vmem:[%s1503_s7 + $0xc8] sm:$0xff] %vm735_vm3, %v732_v43 }

</bundles_post_ra>
